<compile_context>
chip_gen: v7x
topology: tpu7x:2x2x1
jax: 0.10.0
libtpu: 0.0.40
codegen_flags: <defaults>
</compile_context>

<pallas_src>
import functools

import jax
import jax.numpy as jnp
from jax.experimental import pallas as pl
from jax.experimental.pallas import tpu as pltpu

N_FACTORS = 50
F_PAD = 64            # each embedding half zero-padded 50 -> 64
H1, H2, H3 = 128, 256, 128


# ----------------------------- Pallas kernel -----------------------------

def _recnet_mlp_kernel(xu_ref, xm_ref,
                       w1u_ref, w1m_ref, b1_ref,
                       w2_ref, b2_ref,
                       w3_ref, b3_ref,
                       wf_ref, bf_ref,
                       out_ref,
                       *, min_rating, max_rating):
    """One batch tile of the RecommenderNet MLP head (3x Linear+ReLU, fc,
    sigmoid, rating rescale)."""
    # hidden1: split-K matmul over the two embedding halves (bf16 -> f32 acc).
    h1 = jnp.dot(xu_ref[...], w1u_ref[...], preferred_element_type=jnp.float32)
    h1 = h1 + jnp.dot(xm_ref[...], w1m_ref[...],
                      preferred_element_type=jnp.float32)
    h1 = jnp.maximum(h1 + b1_ref[...], 0.0)                      # (TB, 128) f32

    # hidden2
    h2 = jnp.dot(h1.astype(jnp.bfloat16), w2_ref[...],
                 preferred_element_type=jnp.float32)
    h2 = jnp.maximum(h2 + b2_ref[...], 0.0)                      # (TB, 256) f32

    # hidden3
    h3 = jnp.dot(h2.astype(jnp.bfloat16), w3_ref[...],
                 preferred_element_type=jnp.float32)
    h3 = jnp.maximum(h3 + b3_ref[...], 0.0)                      # (TB, 128) f32

    # fc: (1, 128) @ (TB, 128)^T -> lane-dense (1, TB) logits row.
    logits = jax.lax.dot_general(
        wf_ref[...], h3.astype(jnp.bfloat16),
        dimension_numbers=(((1,), (1,)), ((), ())),
        preferred_element_type=jnp.float32)                      # (1, TB)
    logits = logits + bf_ref[...]                                # + fc bias

    # sigmoid: exp and approx reciprocal both go to the EUP slot.
    out = pl.reciprocal(1.0 + jnp.exp(-logits), approx=True)
    out = out * (max_rating - min_rating + 1.0) + (min_rating - 0.5)
    out_ref[...] = out.reshape(out_ref.shape)


def recnet_mlp(u_feat, m_feat, params, minmax=(1.0, 4.0), tile_b=2048):
    """u_feat/m_feat: (B, F_PAD) gathered embedding halves (any float dtype).
    Returns (B, 1) f32 predictions."""
    B, fp = u_feat.shape
    # Keep the batch tile sublane/lane friendly (multiple of 128).
    tb = max(128, ((int(tile_b) + 127) // 128) * 128)
    b_pad = ((B + tb - 1) // tb) * tb
    g = b_pad // tb

    if b_pad != B:
        pad = ((0, b_pad - B), (0, 0))
        u_feat = jnp.pad(u_feat, pad)
        m_feat = jnp.pad(m_feat, pad)
    u_feat = u_feat.astype(jnp.bfloat16)
    m_feat = m_feat.astype(jnp.bfloat16)

    bf16 = lambda a: a.astype(jnp.bfloat16)
    kernel = functools.partial(_recnet_mlp_kernel,
                               min_rating=float(minmax[0]),
                               max_rating=float(minmax[1]))

    feat_spec = pl.BlockSpec((tb, fp), lambda i: (i, 0))
    # Constant block index -> weights/biases stay resident in VMEM.
    const = lambda shape: pl.BlockSpec(shape, lambda i: (0, 0))

    out = pl.pallas_call(
        kernel,
        out_shape=jax.ShapeDtypeStruct((g, 1, tb), jnp.float32),
        grid=(g,),
        in_specs=[feat_spec, feat_spec,
                  const((fp, H1)), const((fp, H1)), const((1, H1)),
                  const((H1, H2)), const((1, H2)),
                  const((H2, H3)), const((1, H3)),
                  const((1, H3)), const((1, 1))],
        out_specs=pl.BlockSpec((1, 1, tb), lambda i: (i, 0, 0)),
        compiler_params=pltpu.CompilerParams(
            dimension_semantics=("parallel",),
            vmem_limit_bytes=32 * 1024 * 1024),
    )(u_feat, m_feat,
      bf16(params["w1u"]), bf16(params["w1m"]), params["b1"],
      bf16(params["w2"]), params["b2"],
      bf16(params["w3"]), params["b3"],
      bf16(params["wf"]), params["bf"])

    # (g, 1, tb) lane-dense tiles -> (B, 1)
    return out.reshape(b_pad, 1)[:B]


# ------------------------- parameter construction -------------------------

def _xavier_uniform(key, fan_in, fan_out):
    limit = jnp.sqrt(6.0 / (fan_in + fan_out))
    # stored as (in, out): kernel computes x @ W
    return jax.random.uniform(key, (fan_in, fan_out), jnp.float32, -limit, limit)


def init_recommender_params(key, n_users, n_movies, n_factors=N_FACTORS):
    ks = jax.random.split(key, 6)
    # Embeddings ~ U(-0.05, 0.05), zero-padded to F_PAD columns.
    u_emb = jnp.zeros((n_users, F_PAD), jnp.float32).at[:, :n_factors].set(
        jax.random.uniform(ks[0], (n_users, n_factors), jnp.float32, -0.05, 0.05))
    m_emb = jnp.zeros((n_movies, F_PAD), jnp.float32).at[:, :n_factors].set(
        jax.random.uniform(ks[1], (n_movies, n_factors), jnp.float32, -0.05, 0.05))
    # Linear(100,128) initialized jointly (PyTorch xavier fan_in=100), then
    # split into the user/movie halves and zero-padded rows 50..63.
    w1_full = _xavier_uniform(ks[2], 2 * n_factors, H1)          # (100, 128)
    w1u = jnp.zeros((F_PAD, H1), jnp.float32).at[:n_factors].set(w1_full[:n_factors])
    w1m = jnp.zeros((F_PAD, H1), jnp.float32).at[:n_factors].set(w1_full[n_factors:])
    params = {
        "u_emb": u_emb, "m_emb": m_emb,
        "w1u": w1u, "w1m": w1m, "b1": jnp.full((1, H1), 0.01, jnp.float32),
        "w2": _xavier_uniform(ks[3], H1, H2), "b2": jnp.full((1, H2), 0.01, jnp.float32),
        "w3": _xavier_uniform(ks[4], H2, H3), "b3": jnp.full((1, H3), 0.01, jnp.float32),
        # fc weight stored as a (1, 128) row for the lane-dense final product.
        "wf": _xavier_uniform(ks[5], H3, 1).T,                   # (1, 128)
        "bf": jnp.full((1, 1), 0.01, jnp.float32),
    }
    return params


# ------------------------------ forward pass ------------------------------

def recommender_forward(params, users, movies, minmax=(1.0, 4.0), tile_b=2048):
    """Eval-mode forward (dropout = identity)."""
    # Embedding gathers stay in plain JAX; no concat is materialized (the two
    # halves feed the kernel separately against the split w1).
    u_feat = params["u_emb"][users]                              # (B, F_PAD)
    m_feat = params["m_emb"][movies]                             # (B, F_PAD)
    # TODO(synk): training-mode dropout (embedding_dropout / dropout_rate) would
    # use pltpu.prng_seed + pltpu.stateful_bernoulli inside the kernel.
    return recnet_mlp(u_feat, m_feat, params, minmax, tile_b)


# Pure-JAX f32 reference (original concatenated formulation) for sanity check.
def recommender_forward_ref(params, users, movies, n_factors=N_FACTORS,
                            minmax=(1.0, 4.0)):
    u = params["u_emb"][:, :n_factors][users]
    m = params["m_emb"][:, :n_factors][movies]
    x = jnp.concatenate([u, m], axis=1)                          # (B, 100)
    w1 = jnp.concatenate([params["w1u"][:n_factors],
                          params["w1m"][:n_factors]], axis=0)    # (100, 128)
    x = jnp.maximum(x @ w1 + params["b1"], 0.0)
    x = jnp.maximum(x @ params["w2"] + params["b2"], 0.0)
    x = jnp.maximum(x @ params["w3"] + params["b3"], 0.0)
    out = jax.nn.sigmoid(x @ params["wf"].T + params["bf"])      # (B, 1)
    mn, mx = minmax
    return out * (mx - mn + 1.0) + mn - 0.5


# ---------------------------------- main ----------------------------------

if __name__ == "__main__":
    key = jax.random.PRNGKey(0)
    k_param, k_u, k_m = jax.random.split(key, 3)

    n_users, n_movies = 20, 30
    batch = 8

    params = init_recommender_params(k_param, n_users, n_movies)

    users = jax.random.randint(k_u, (batch,), 0, n_users, dtype=jnp.int32)
    movies = jax.random.randint(k_m, (batch,), 0, n_movies, dtype=jnp.int32)

    # Small tile for the demo; production default is tile_b=2048 (large enough
    # to amortize per-grid-step overhead, small enough for v7x's 64 MiB VMEM).
    out = recommender_forward(params, users, movies, tile_b=256)
    out = jax.block_until_ready(out)

    ref = recommender_forward_ref(params, users, movies)
    assert out.shape == (batch, 1), out.shape
    # bf16 matmuls + approx reciprocal -> loosened tolerance vs the f32 reference.
    assert jnp.allclose(out, ref, atol=3e-2, rtol=3e-2), (out, ref)

    print("KERNEL_OK")
</pallas_src>

<mosaic_0001>
module attributes {stable_mosaic.version = 11 : i64} {
  func.func @_recnet_mlp_kernel(%arg0: i32, %arg1: memref<256x64xbf16, #tpu.memory_space<vmem>>, %arg2: memref<256x64xbf16, #tpu.memory_space<vmem>>, %arg3: memref<64x128xbf16, #tpu.memory_space<vmem>>, %arg4: memref<64x128xbf16, #tpu.memory_space<vmem>>, %arg5: memref<1x128xf32, #tpu.memory_space<vmem>>, %arg6: memref<128x256xbf16, #tpu.memory_space<vmem>>, %arg7: memref<1x256xf32, #tpu.memory_space<vmem>>, %arg8: memref<256x128xbf16, #tpu.memory_space<vmem>>, %arg9: memref<1x128xf32, #tpu.memory_space<vmem>>, %arg10: memref<1x128xbf16, #tpu.memory_space<vmem>>, %arg11: memref<1x1xf32, #tpu.memory_space<vmem>>, %arg12: memref<1x1x256xf32, #tpu.memory_space<vmem>>) attributes {dimension_semantics = [#tpu.dimension_semantics<parallel>], iteration_bounds = array<i64: 1>, scalar_prefetch = 0 : i64, scratch_operands = 0 : i64, tpu.core_type = #tpu.core_type<tc>, window_params = [{transform_indices = @transform_0, window_bounds = array<i64: 256, 64>}, {transform_indices = @transform_1, window_bounds = array<i64: 256, 64>}, {pipeline_mode = #tpu.pipeline_mode<synchronous>, transform_indices = @transform_2, window_bounds = array<i64: 64, 128>}, {pipeline_mode = #tpu.pipeline_mode<synchronous>, transform_indices = @transform_3, window_bounds = array<i64: 64, 128>}, {pipeline_mode = #tpu.pipeline_mode<synchronous>, transform_indices = @transform_4, window_bounds = array<i64: 1, 128>}, {pipeline_mode = #tpu.pipeline_mode<synchronous>, transform_indices = @transform_5, window_bounds = array<i64: 128, 256>}, {pipeline_mode = #tpu.pipeline_mode<synchronous>, transform_indices = @transform_6, window_bounds = array<i64: 1, 256>}, {pipeline_mode = #tpu.pipeline_mode<synchronous>, transform_indices = @transform_7, window_bounds = array<i64: 256, 128>}, {pipeline_mode = #tpu.pipeline_mode<synchronous>, transform_indices = @transform_8, window_bounds = array<i64: 1, 128>}, {pipeline_mode = #tpu.pipeline_mode<synchronous>, transform_indices = @transform_9, window_bounds = array<i64: 1, 128>}, {pipeline_mode = #tpu.pipeline_mode<synchronous>, transform_indices = @transform_10, window_bounds = array<i64: 1, 1>}, {transform_indices = @transform_11, window_bounds = array<i64: 1, 1, 256>}]} {
    %c0 = arith.constant 0 : index
    %c0_0 = arith.constant 0 : index
    %0 = vector.load %arg1[%c0, %c0_0] : memref<256x64xbf16, #tpu.memory_space<vmem>>, vector<256x64xbf16>
    %c0_1 = arith.constant 0 : index
    %c0_2 = arith.constant 0 : index
    %1 = vector.load %arg3[%c0_1, %c0_2] : memref<64x128xbf16, #tpu.memory_space<vmem>>, vector<64x128xbf16>
    %cst = arith.constant dense<0.000000e+00> : vector<256x128xf32>
    %2 = tpu.matmul %0, %1, %cst {dimension_numbers = #tpu.dot_dimension_numbers<[1], [0], [0], [1], [0, 0, 1, 1], [], []>} : vector<256x64xbf16>, vector<64x128xbf16>, vector<256x128xf32> -> vector<256x128xf32>
    %c0_3 = arith.constant 0 : index
    %c0_4 = arith.constant 0 : index
    %3 = vector.load %arg2[%c0_3, %c0_4] : memref<256x64xbf16, #tpu.memory_space<vmem>>, vector<256x64xbf16>
    %c0_5 = arith.constant 0 : index
    %c0_6 = arith.constant 0 : index
    %4 = vector.load %arg4[%c0_5, %c0_6] : memref<64x128xbf16, #tpu.memory_space<vmem>>, vector<64x128xbf16>
    %cst_7 = arith.constant dense<0.000000e+00> : vector<256x128xf32>
    %5 = tpu.matmul %3, %4, %cst_7 {dimension_numbers = #tpu.dot_dimension_numbers<[1], [0], [0], [1], [0, 0, 1, 1], [], []>} : vector<256x64xbf16>, vector<64x128xbf16>, vector<256x128xf32> -> vector<256x128xf32>
    %6 = arith.addf %2, %5 : vector<256x128xf32>
    %c0_8 = arith.constant 0 : index
    %c0_9 = arith.constant 0 : index
    %7 = vector.load %arg5[%c0_8, %c0_9] : memref<1x128xf32, #tpu.memory_space<vmem>>, vector<1x128xf32>
    %8 = vector.broadcast %7 : vector<1x128xf32> to vector<256x128xf32>
    %9 = arith.addf %6, %8 : vector<256x128xf32>
    %cst_10 = arith.constant 0.000000e+00 : f32
    %10 = vector.broadcast %cst_10 : f32 to vector<256x128xf32>
    %11 = arith.maximumf %9, %10 : vector<256x128xf32>
    %12 = arith.truncf %11 : vector<256x128xf32> to vector<256x128xbf16>
    %c0_11 = arith.constant 0 : index
    %c0_12 = arith.constant 0 : index
    %13 = vector.load %arg6[%c0_11, %c0_12] : memref<128x256xbf16, #tpu.memory_space<vmem>>, vector<128x256xbf16>
    %cst_13 = arith.constant dense<0.000000e+00> : vector<256x256xf32>
    %14 = tpu.matmul %12, %13, %cst_13 {dimension_numbers = #tpu.dot_dimension_numbers<[1], [0], [0], [1], [0, 0, 1, 1], [], []>} : vector<256x128xbf16>, vector<128x256xbf16>, vector<256x256xf32> -> vector<256x256xf32>
    %c0_14 = arith.constant 0 : index
    %c0_15 = arith.constant 0 : index
    %15 = vector.load %arg7[%c0_14, %c0_15] : memref<1x256xf32, #tpu.memory_space<vmem>>, vector<1x256xf32>
    %16 = vector.broadcast %15 : vector<1x256xf32> to vector<256x256xf32>
    %17 = arith.addf %14, %16 : vector<256x256xf32>
    %cst_16 = arith.constant 0.000000e+00 : f32
    %18 = vector.broadcast %cst_16 : f32 to vector<256x256xf32>
    %19 = arith.maximumf %17, %18 : vector<256x256xf32>
    %20 = arith.truncf %19 : vector<256x256xf32> to vector<256x256xbf16>
    %c0_17 = arith.constant 0 : index
    %c0_18 = arith.constant 0 : index
    %21 = vector.load %arg8[%c0_17, %c0_18] : memref<256x128xbf16, #tpu.memory_space<vmem>>, vector<256x128xbf16>
    %cst_19 = arith.constant dense<0.000000e+00> : vector<256x128xf32>
    %22 = tpu.matmul %20, %21, %cst_19 {dimension_numbers = #tpu.dot_dimension_numbers<[1], [0], [0], [1], [0, 0, 1, 1], [], []>} : vector<256x256xbf16>, vector<256x128xbf16>, vector<256x128xf32> -> vector<256x128xf32>
    %c0_20 = arith.constant 0 : index
    %c0_21 = arith.constant 0 : index
    %23 = vector.load %arg9[%c0_20, %c0_21] : memref<1x128xf32, #tpu.memory_space<vmem>>, vector<1x128xf32>
    %24 = vector.broadcast %23 : vector<1x128xf32> to vector<256x128xf32>
    %25 = arith.addf %22, %24 : vector<256x128xf32>
    %cst_22 = arith.constant 0.000000e+00 : f32
    %26 = vector.broadcast %cst_22 : f32 to vector<256x128xf32>
    %27 = arith.maximumf %25, %26 : vector<256x128xf32>
    %c0_23 = arith.constant 0 : index
    %c0_24 = arith.constant 0 : index
    %28 = vector.load %arg10[%c0_23, %c0_24] : memref<1x128xbf16, #tpu.memory_space<vmem>>, vector<1x128xbf16>
    %29 = arith.truncf %27 : vector<256x128xf32> to vector<256x128xbf16>
    %cst_25 = arith.constant dense<0.000000e+00> : vector<1x256xf32>
    %30 = tpu.matmul %28, %29, %cst_25 {dimension_numbers = #tpu.dot_dimension_numbers<[1], [1], [0], [0], [0, 0, 1, 0], [], []>} : vector<1x128xbf16>, vector<256x128xbf16>, vector<1x256xf32> -> vector<1x256xf32>
    %c0_26 = arith.constant 0 : index
    %c0_27 = arith.constant 0 : index
    %31 = vector.load %arg11[%c0_26, %c0_27] : memref<1x1xf32, #tpu.memory_space<vmem>>, vector<1x1xf32>
    %32 = vector.broadcast %31 : vector<1x1xf32> to vector<1x256xf32>
    %33 = arith.addf %30, %32 : vector<1x256xf32>
    %cst_28 = arith.constant 0.000000e+00 : f32
    %34 = vector.broadcast %cst_28 : f32 to vector<1x256xf32>
    %35 = arith.subf %34, %33 : vector<1x256xf32>
    %36 = math.exp %35 : vector<1x256xf32>
    %cst_29 = arith.constant 1.000000e+00 : f32
    %37 = vector.broadcast %cst_29 : f32 to vector<1x256xf32>
    %38 = arith.addf %37, %36 : vector<1x256xf32>
    %39 = tpu.reciprocal %38 {approx = true} : vector<1x256xf32> -> vector<1x256xf32>
    %cst_30 = arith.constant 4.000000e+00 : f32
    %40 = vector.broadcast %cst_30 : f32 to vector<1x256xf32>
    %41 = arith.mulf %39, %40 : vector<1x256xf32>
    %cst_31 = arith.constant 5.000000e-01 : f32
    %42 = vector.broadcast %cst_31 : f32 to vector<1x256xf32>
    %43 = arith.addf %41, %42 : vector<1x256xf32>
    %44 = vector.shape_cast %43 : vector<1x256xf32> to vector<1x1x256xf32>
    %c0_32 = arith.constant 0 : index
    %c0_33 = arith.constant 0 : index
    %c0_34 = arith.constant 0 : index
    %45 = vector.load %arg12[%c0_32, %c0_33, %c0_34] : memref<1x1x256xf32, #tpu.memory_space<vmem>>, vector<1x1x256xf32>
    tpu.vector_store %arg12[%c0_32, %c0_33, %c0_34], %44 {strides = array<i32>} : memref<1x1x256xf32, #tpu.memory_space<vmem>>, vector<1x1x256xf32>,
    return
  }
  func.func @transform_0(%arg0: i32) -> (i32, i32) {
    %c0_i32 = arith.constant 0 : i32
    %c0_i32_0 = arith.constant 0 : i32
    return %arg0, %c0_i32 : i32, i32
  }
  func.func @transform_1(%arg0: i32) -> (i32, i32) {
    %c0_i32 = arith.constant 0 : i32
    %c0_i32_0 = arith.constant 0 : i32
    return %arg0, %c0_i32 : i32, i32
  }
  func.func @transform_2(%arg0: i32) -> (i32, i32) {
    %c0_i32 = arith.constant 0 : i32
    %c0_i32_0 = arith.constant 0 : i32
    %c0_i32_1 = arith.constant 0 : i32
    return %c0_i32, %c0_i32_0 : i32, i32
  }
  func.func @transform_3(%arg0: i32) -> (i32, i32) {
    %c0_i32 = arith.constant 0 : i32
    %c0_i32_0 = arith.constant 0 : i32
    %c0_i32_1 = arith.constant 0 : i32
    return %c0_i32, %c0_i32_0 : i32, i32
  }
  func.func @transform_4(%arg0: i32) -> (i32, i32) {
    %c0_i32 = arith.constant 0 : i32
    %c0_i32_0 = arith.constant 0 : i32
    %c0_i32_1 = arith.constant 0 : i32
    return %c0_i32, %c0_i32_0 : i32, i32
  }
  func.func @transform_5(%arg0: i32) -> (i32, i32) {
    %c0_i32 = arith.constant 0 : i32
    %c0_i32_0 = arith.constant 0 : i32
    %c0_i32_1 = arith.constant 0 : i32
    return %c0_i32, %c0_i32_0 : i32, i32
  }
  func.func @transform_6(%arg0: i32) -> (i32, i32) {
    %c0_i32 = arith.constant 0 : i32
    %c0_i32_0 = arith.constant 0 : i32
    %c0_i32_1 = arith.constant 0 : i32
    return %c0_i32, %c0_i32_0 : i32, i32
  }
  func.func @transform_7(%arg0: i32) -> (i32, i32) {
    %c0_i32 = arith.constant 0 : i32
    %c0_i32_0 = arith.constant 0 : i32
    %c0_i32_1 = arith.constant 0 : i32
    return %c0_i32, %c0_i32_0 : i32, i32
  }
  func.func @transform_8(%arg0: i32) -> (i32, i32) {
    %c0_i32 = arith.constant 0 : i32
    %c0_i32_0 = arith.constant 0 : i32
    %c0_i32_1 = arith.constant 0 : i32
    return %c0_i32, %c0_i32_0 : i32, i32
  }
  func.func @transform_9(%arg0: i32) -> (i32, i32) {
    %c0_i32 = arith.constant 0 : i32
    %c0_i32_0 = arith.constant 0 : i32
    %c0_i32_1 = arith.constant 0 : i32
    return %c0_i32, %c0_i32_0 : i32, i32
  }
  func.func @transform_10(%arg0: i32) -> (i32, i32) {
    %c0_i32 = arith.constant 0 : i32
    %c0_i32_0 = arith.constant 0 : i32
    %c0_i32_1 = arith.constant 0 : i32
    return %c0_i32, %c0_i32_0 : i32, i32
  }
  func.func @transform_11(%arg0: i32) -> (i32, i32, i32) {
    %c0_i32 = arith.constant 0 : i32
    %c0_i32_0 = arith.constant 0 : i32
    %c0_i32_1 = arith.constant 0 : i32
    return %arg0, %c0_i32, %c0_i32_0 : i32, i32, i32
  }
}

</mosaic_0001>

<bundles_post_ra>
// kernel: tpu_custom_call.1
= control target key start
LH: loop header
LB: loop body
LE: loop exit
PB: predicated region body
PF: predicated region fallthrough
CT: control target
= control target key end

     0   :  { %s2729_s0 = inlined_call_operand.vmem [shape: bf16[256,64], index: 0, kind: input, shape index: {}]   ;;  %s2730_s1 = inlined_call_operand.vmem [shape: bf16[256,64], index: 1, kind: input, shape index: {}]   ;;  %s2731_s2 = inlined_call_operand.vmem [shape: bf16[64,128], index: 2, kind: input, shape index: {}]   ;;  %s2732_s3 = inlined_call_operand.vmem [shape: bf16[64,128], index: 3, kind: input, shape index: {}]   ;;  %s2733_s4 = inlined_call_operand.vmem [shape: f32[1,128], index: 4, kind: input, shape index: {}]   ;;  %s2734_s5 = inlined_call_operand.vmem [shape: bf16[128,256], index: 5, kind: input, shape index: {}]   ;;  %s2735_s6 = inlined_call_operand.vmem [shape: f32[1,256], index: 6, kind: input, shape index: {}]   ;;  %s2736_s7 = inlined_call_operand.vmem [shape: bf16[256,128], index: 7, kind: input, shape index: {}]   ;;  %s2737_s8 = inlined_call_operand.vmem [shape: f32[1,128], index: 8, kind: input, shape index: {}]   ;;  %s2738_s9 = inlined_call_operand.vmem [shape: bf16[1,128], index: 9, kind: input, shape index: {}]   ;;  %s2739_s10 = inlined_call_operand.<no memory space> [shape: f32[1,1], index: 10, kind: input, shape index: {}]   ;;  %s2740_s11 = inlined_call_operand.hbm [shape: f32[1,1,256], index: 11, kind: output, shape index: {}]  }
   0x1   :  { %v16_v0 = vstv %s2739_s10 }
   0x2   :  { %17 = vst [vmem:[#allocation2] sm:$0x1] %v16_v0 }
   0x3   :  { %v2072_v1 = vld [vmem:[%s2732_s3] sm:$0xff]   ;;  %v2074_v3 = vld [vmem:[%s2732_s3 + $0x8] sm:$0xff]   ;;  %v2076_v5 = vld [vmem:[%s2732_s3 + $0x10] sm:$0xff]   ;;  %vm226_vm0 = vcmask 523264  }
   0x4   :  { %v2073_v2 = vld [vmem:[%s2731_s2] sm:$0xff]   ;;  %1956 = vmatprep.subr.bf16.mxu1 %v2072_v1  ;;  %v2075_v4 = vld [vmem:[%s2731_s2 + $0x8] sm:$0xff]   ;;  %v2077_v6 = vld [vmem:[%s2731_s2 + $0x10] sm:$0xff]  }
   0x5   :  { %1996 = vmatprep.subr.bf16.mxu0 %v2073_v2  ;;  %1957 = vmatpush3.bf16.msra.mxu1 %v2072_v1  ;;  %v2078_v7 = vld [vmem:[%s2732_s3 + $0x18] sm:$0xff]   ;;  %v2080_v9 = vld [vmem:[%s2730_s1] sm:$0xff]   ;;  %v2082_v11 = vld [vmem:[%s2730_s1 + $0x8] sm:$0xff]  }
   0x6   :  { %1997 = vmatpush3.bf16.msra.mxu0 %v2073_v2  ;;  %1958 = vmatprep.subr.bf16.mxu1 %v2074_v3  ;;  %v2079_v8 = vld [vmem:[%s2731_s2 + $0x18] sm:$0xff]   ;;  %v2081_v10 = vld [vmem:[%s2729_s0] sm:$0xff]   ;;  %v2083_v12 = vld [vmem:[%s2729_s0 + $0x8] sm:$0xff]  }
   0x7   :  { %1998 = vmatprep.subr.bf16.mxu0 %v2075_v4  ;;  %1964 = vmatprep.mubr.msk.bf16.mxu1 %vm226_vm0, %v2080_v9  ;;  %v2084_v13 = vld [vmem:[%s2730_s1 + $0x10] sm:$0xff]   ;;  %v2086_v15 = vld [vmem:[%s2730_s1 + $0x18] sm:$0xff]   ;;  %v2088_v17 = vld [vmem:[%s2730_s1 + $0x20] sm:$0xff]  }
   0x8   :  { %2004 = vmatprep.mubr.msk.bf16.mxu0 %vm226_vm0, %v2081_v10  ;;  %v2085_v14 = vld [vmem:[%s2729_s0 + $0x10] sm:$0xff]   ;;  %v2087_v16 = vld [vmem:[%s2729_s0 + $0x18] sm:$0xff]   ;;  %v2089_v18 = vld [vmem:[%s2729_s0 + $0x20] sm:$0xff]  }
   0x9   :  { %1959 = vmatpush3.bf16.msra.mxu1 %v2074_v3  ;;  %v2090_v19 = vld [vmem:[%s2730_s1 + $0x28] sm:$0xff]   ;;  %v2092_v21 = vld [vmem:[%s2730_s1 + $0x30] sm:$0xff]   ;;  %v2094_v23 = vld [vmem:[%s2730_s1 + $0x38] sm:$0xff]  }
   0xa   :  { %1999 = vmatpush3.bf16.msra.mxu0 %v2075_v4  ;;  %1960 = vmatprep.subr.bf16.mxu1 %v2076_v5  ;;  %v2091_v20 = vld [vmem:[%s2729_s0 + $0x28] sm:$0xff]   ;;  %v2093_v22 = vld [vmem:[%s2729_s0 + $0x30] sm:$0xff]   ;;  %v2095_v24 = vld [vmem:[%s2729_s0 + $0x38] sm:$0xff]  }
   0xb   :  { %2000 = vmatprep.subr.bf16.mxu0 %v2077_v6  ;;  %v2096_v25 = vld [vmem:[%s2730_s1 + $0x40] sm:$0xff]   ;;  %v2117_v29 = vld [vmem:[%s2734_s5 + $0x14] ss:$8 sps:$4 sm:$0xff]   ;;  %v2098_v30 = vld [vmem:[%s2730_s1 + $0x48] sm:$0xff]  }
   0xc   :  { %v2097_v26 = vld [vmem:[%s2729_s0 + $0x40] sm:$0xff]   ;;  %v2099_v31 = vld [vmem:[%s2729_s0 + $0x48] sm:$0xff]   ;;  %v2100_v32 = vld [vmem:[%s2730_s1 + $0x50] sm:$0xff]  }
   0xd   :  { %1961 = vmatpush3.bf16.msra.mxu1 %v2076_v5  ;;  %v2112_v27 = vld [vmem:[%s2734_s5] ss:$8 sps:$4 sm:$0xff]   ;;  %v2114_v28 = vld [vmem:[%s2734_s5 + $0x4] ss:$8 sps:$4 sm:$0xff]   ;;  %v2115_v33 = vld [vmem:[%s2734_s5 + $0x10] ss:$8 sps:$4 sm:$0xff]  }
   0xe   :  { %2001 = vmatpush3.bf16.msra.mxu0 %v2077_v6  ;;  %1962 = vmatprep.subr.bf16.mxu1 %v2078_v7  ;;  %v2101_v34 = vld [vmem:[%s2729_s0 + $0x50] sm:$0xff]   ;;  %v2120_v35 = vld [vmem:[%s2734_s5 + $0x24] ss:$8 sps:$4 sm:$0xff]   ;;  %v2118_v36 = vld [vmem:[%s2734_s5 + $0x20] ss:$8 sps:$4 sm:$0xff]  }
   0xf   :  { %2002 = vmatprep.subr.bf16.mxu0 %v2079_v8  ;;  %v2123_v37 = vld [vmem:[%s2734_s5 + $0x34] ss:$8 sps:$4 sm:$0xff]   ;;  %v2121_v38 = vld [vmem:[%s2734_s5 + $0x30] ss:$8 sps:$4 sm:$0xff]   ;;  %v2126_v40 = vld [vmem:[%s2734_s5 + $0x44] ss:$8 sps:$4 sm:$0xff]  }
  0x10   :  { %v2102_v39 = vld [vmem:[%s2730_s1 + $0x58] sm:$0xff]   ;;  %v2104_v42 = vld [vmem:[%s2730_s1 + $0x60] sm:$0xff]  }
  0x11   :  { %1963 = vmatpush3.bf16.msra.mxu1 %v2078_v7  ;;  %v2103_v41 = vld [vmem:[%s2729_s0 + $0x58] sm:$0xff]   ;;  %v2105_v43 = vld [vmem:[%s2729_s0 + $0x60] sm:$0xff]  }
  0x12   :  { %2003 = vmatpush3.bf16.msra.mxu0 %v2079_v8  ;;  %944 = vmatprep.subr.bf16.mxu1 %v2114_v28  ;;  %v2124_v44 = vld [vmem:[%s2734_s5 + $0x40] ss:$8 sps:$4 sm:$0xff]  }
  0x14   :  { %1965 = vmatmul.mubr.msk.bf16.vlgmr.msra.gmra.mrb[0].mxu1 %vm226_vm0, %v2082_v11 }
  0x15   :  { %2005 = vmatmul.mubr.msk.bf16.vlgmr.msra.gmra.mrb[0].mxu0 %vm226_vm0, %v2083_v12  ;;  %1968 = vmatprep.mubr.msk.bf16.mxu1 %vm226_vm0, %v2084_v13 }
  0x16   :  { %2008 = vmatprep.mubr.msk.bf16.mxu0 %vm226_vm0, %v2085_v14  ;;  %945 = vmatpush1.bf16.msra.mxu1 %v2112_v27 }
  0x17   :  { %946 = vmatprep.subr.bf16.mxu1 %v2117_v29 }
  0x1a   :  { %947 = vmatpush1.bf16.msra.mxu1 %v2115_v33 }
  0x1b   :  { %948 = vmatprep.subr.bf16.mxu1 %v2120_v35 }
  0x1c   :  { %1969 = vmatmul.mubr.msk.bf16.gmra.mrb[4].mxu1 %vm226_vm0, %v2086_v15 }
  0x1d   :  { %2009 = vmatmul.mubr.msk.bf16.gmra.mrb[4].mxu0 %vm226_vm0, %v2087_v16  ;;  %1972 = vmatprep.mubr.msk.bf16.mxu1 %vm226_vm0, %v2088_v17 }
  0x1e   :  { %2012 = vmatprep.mubr.msk.bf16.mxu0 %vm226_vm0, %v2089_v18  ;;  %949 = vmatpush1.bf16.msra.mxu1 %v2118_v36 }
  0x1f   :  { %950 = vmatprep.subr.bf16.mxu1 %v2123_v37 }
  0x22   :  { %951 = vmatpush1.bf16.msra.mxu1 %v2121_v38 }
  0x23   :  { %952 = vmatprep.subr.bf16.mxu1 %v2126_v40 }
  0x24   :  { %1973 = vmatmul.mubr.msk.bf16.gmra.mrb[8].mxu1 %vm226_vm0, %v2090_v19 }
  0x25   :  { %2013 = vmatmul.mubr.msk.bf16.gmra.mrb[8].mxu0 %vm226_vm0, %v2091_v20  ;;  %1976 = vmatprep.mubr.msk.bf16.mxu1 %vm226_vm0, %v2092_v21 }
  0x26   :  { %2016 = vmatprep.mubr.msk.bf16.mxu0 %vm226_vm0, %v2093_v22 }
  0x2c   :  { %1977 = vmatmul.mubr.msk.bf16.gmra.mrb[12].mxu1 %vm226_vm0, %v2094_v23 }
  0x2d   :  { %2017 = vmatmul.mubr.msk.bf16.gmra.mrb[12].mxu0 %vm226_vm0, %v2095_v24  ;;  %1980 = vmatprep.mubr.msk.bf16.mxu1 %vm226_vm0, %v2096_v25 }
  0x2e   :  { %2020 = vmatprep.mubr.msk.bf16.mxu0 %vm226_vm0, %v2097_v26 }
  0x34   :  { %1981 = vmatmul.mubr.msk.bf16.gmra.mrb[16].mxu1 %vm226_vm0, %v2098_v30 }
  0x35   :  { %2021 = vmatmul.mubr.msk.bf16.gmra.mrb[16].mxu0 %vm226_vm0, %v2099_v31  ;;  %1984 = vmatprep.mubr.msk.bf16.mxu1 %vm226_vm0, %v2100_v32 }
  0x36   :  { %2024 = vmatprep.mubr.msk.bf16.mxu0 %vm226_vm0, %v2101_v34 }
  0x3c   :  { %1985 = vmatmul.mubr.msk.bf16.gmra.mrb[20].mxu1 %vm226_vm0, %v2102_v39 }
  0x3d   :  { %2025 = vmatmul.mubr.msk.bf16.gmra.mrb[20].mxu0 %vm226_vm0, %v2103_v41  ;;  %1988 = vmatprep.mubr.msk.bf16.mxu1 %vm226_vm0, %v2104_v42 }
  0x3e   :  { %18 = vsyncpa [#allocation4], 0  ;;  %2028 = vmatprep.mubr.msk.bf16.mxu0 %vm226_vm0, %v2105_v43  ;;  %953 = vmatpush1.bf16.msra.mxu1 %v2124_v44  ;;  %v2106_v45 = vld [vmem:[%s2730_s1 + $0x68] sm:$0xff]   ;;  %v2108_v47 = vld [vmem:[%s2730_s1 + $0x70] sm:$0xff]   ;;  %v2184_v57 = vmov 0  }
  0x3f   :  { %v2107_v46 = vld [vmem:[%s2729_s0 + $0x68] sm:$0xff]   ;;  %v2109_v48 = vld [vmem:[%s2729_s0 + $0x70] sm:$0xff]   ;;  %v2110_v49 = vld [vmem:[%s2730_s1 + $0x78] sm:$0xff]   ;;  %2071 = vset.pattern.permute.xlu0 %v2184_v57 }
  0x40   :  { %v2111_v50 = vld [vmem:[%s2729_s0 + $0x78] sm:$0xff]   ;;  %v2132_v53 = vld [vmem:[%s2734_s5 + $0x64] ss:$8 sps:$4 sm:$0xff]   ;;  %v2130_v54 = vld [vmem:[%s2734_s5 + $0x60] ss:$8 sps:$4 sm:$0xff]  }
  0x41   :  { %v2129_v51 = vld [vmem:[%s2734_s5 + $0x54] ss:$8 sps:$4 sm:$0xff]   ;;  %v2127_v52 = vld [vmem:[%s2734_s5 + $0x50] ss:$8 sps:$4 sm:$0xff]   ;;  %v2455_v60 = vld [vmem:[%s2733_s4] ss:$0 sm:$0xff] }
  0x42   :  { %954 = vmatprep.subr.bf16.mxu1 %v2129_v51  ;;  %v2135_v55 = vld [vmem:[%s2734_s5 + $0x74] ss:$8 sps:$4 sm:$0xff]   ;;  %v2133_v56 = vld [vmem:[%s2734_s5 + $0x70] ss:$8 sps:$4 sm:$0xff]   ;;  %v2136_v9 = vld [vmem:[%s2736_s7 + $0x40] sm:$0xff]  }
  0x43   :  { %955 = vmatpush1.bf16.msra.mxu1 %v2127_v52  ;;  %v2137_v10 = vld [vmem:[%s2736_s7] sm:$0xff]   ;;  %v2138_v11 = vld [vmem:[%s2736_s7 + $0x48] sm:$0xff]   ;;  %1826 = vmatprep.subr.bf16.mxu0 %v2136_v9  ;;  %v2140_v22 = vld [vmem:[%s2736_s7 + $0x50] sm:$0xff]  }
  0x44   :  { %1989 = vmatmul.mubr.msk.bf16.gmra.mrb[24].mxu1 %vm226_vm0, %v2106_v45  ;;  %956 = vmatprep.subr.bf16.mxu1 %v2132_v53  ;;  %v2139_v17 = vld [vmem:[%s2736_s7 + $0x8] sm:$0xff]   ;;  %v2141_v34 = vld [vmem:[%s2736_s7 + $0x10] sm:$0xff]   ;;  %v2142_v37 = vld [vmem:[%s2736_s7 + $0x58] sm:$0xff]  }
  0x45   :  { %2029 = vmatmul.mubr.msk.bf16.gmra.mrb[24].mxu0 %vm226_vm0, %v2107_v46  ;;  %1992 = vmatprep.mubr.msk.bf16.mxu1 %vm226_vm0, %v2108_v47  ;;  %v2143_v44 = vld [vmem:[%s2736_s7 + $0x18] sm:$0xff]  }
  0x46   :  { %2032 = vmatprep.mubr.msk.bf16.mxu0 %vm226_vm0, %v2109_v48  ;;  %1827 = vmatpush3.bf16.msra.mxu0 %v2137_v10  ;;  %v2144_v48 = vld [vmem:[%s2736_s7 + $0x60] sm:$0xff]  }
  0x47   :  { %957 = vmatpush1.bf16.msra.mxu1 %v2130_v54  ;;  %1828 = vmatprep.subr.bf16.mxu0 %v2138_v11 }
  0x48   :  { %958 = vmatprep.subr.bf16.mxu1 %v2135_v55 }
  0x4a   :  { %1829 = vmatpush3.bf16.msra.mxu0 %v2139_v17 }
  0x4b   :  { %959 = vmatpush1.bf16.msra.mxu1 %v2133_v56  ;;  %1830 = vmatprep.subr.bf16.mxu0 %v2140_v22 }
  0x4c   :  { %1993 = vmatmul.mubr.msk.bf16.gmra.mrb[28].mxu1 %vm226_vm0, %v2110_v49 }
  0x4d   :  { %2033 = vmatmul.mubr.msk.bf16.gmra.mrb[28].mxu0 %vm226_vm0, %v2111_v50  ;;  %976 = vmatprep.mubr.bf16.mxu1 %v2184_v57 }
  0x4e   :  { %1831 = vmatpush3.bf16.msra.mxu0 %v2141_v34 }
  0x4f   :  { %1832 = vmatprep.subr.bf16.mxu0 %v2142_v37 }
  0x52   :  { %1833 = vmatpush3.bf16.msra.mxu0 %v2143_v44 }
  0x53   :  { %1834 = vmatprep.subr.bf16.mxu0 %v2144_v48 }
  0xe7   :  { %v1966_v58 = vpop.f32.mrb[0].mxu1 }
  0xe8   :  { %v2006_v59 = vpop.f32.mrb[0].mxu0  ;;  %v309_v61 = vpop.f32.mrb[1].mxu1 }
  0xe9   :  { %v631_v62 = vadd.f32 %v2006_v59, %v1966_v58  ;;  %v622_v63 = vpop.f32.mrb[1].mxu0  ;;  %v1967_v0 = vpop.f32.mrb[2].mxu1 }
  0xea   :  { %v623_v1 = vadd.f32 %v622_v63, %v309_v61  ;;  %v2007_v2 = vpop.f32.mrb[2].mxu0  ;;  %v312_v3 = vpop.f32.mrb[3].mxu1 }
  0xeb   :  { %v758_v4 = vadd.f32 %v2455_v60, %v631_v62  ;;  %v634_v5 = vadd.f32 %v2007_v2, %v1967_v0  ;;  %v625_v6 = vpop.f32.mrb[3].mxu0  ;;  %v2145_v62 = vld [vmem:[%s2736_s7 + $0x20] sm:$0xff]  }
  0xec   :  { %v756_v7 = vadd.f32 %v2455_v60, %v623_v1  ;;  %v626_v8 = vadd.f32 %v625_v6, %v312_v3  ;;  %v2146_v1 = vld [vmem:[%s2736_s7 + $0x68] sm:$0xff]   ;;  %1835 = vmatpush3.bf16.msra.mxu0 %v2145_v62 }
  0xed   :  { %v759_v12 = vadd.f32 %v2455_v60, %v634_v5  ;;  %v790_v14 = vmax.f32 %v758_v4, 0.0  ;;  %1836 = vmatprep.subr.bf16.mxu0 %v2146_v1 }
  0xee   :  { %v757_v13 = vadd.f32 %v2455_v60, %v626_v8  ;;  %v788_v18 = vmax.f32 %v756_v7, 0.0 }
  0xef   :  { %v791_v15 = vmax.f32 %v759_v12, 0.0  ;;  %v1970_v16 = vpop.f32.mrb[4].mxu1 }
  0xf0   :  { %v789_v19 = vmax.f32 %v757_v13, 0.0  ;;  %v2010_v20 = vpop.f32.mrb[4].mxu0  ;;  %v325_v21 = vpop.f32.mrb[5].mxu1 }
  0xf1   :  { %v647_v23 = vadd.f32 %v2010_v20, %v1970_v16  ;;  %v638_v24 = vpop.f32.mrb[5].mxu0  ;;  %v1971_v25 = vpop.f32.mrb[6].mxu1  ;;  %v821_v26 = vpack.c.bf16 %v791_v15, %v790_v14 }
  0xf2   :  { %v820_v27 = vpack.c.bf16 %v789_v19, %v788_v18  ;;  %v639_v28 = vadd.f32 %v638_v24, %v325_v21  ;;  %v2011_v29 = vpop.f32.mrb[6].mxu0  ;;  %v328_v30 = vpop.f32.mrb[7].mxu1 }
  0xf3   :  { %v762_v31 = vadd.f32 %v2455_v60, %v647_v23  ;;  %v650_v32 = vadd.f32 %v2011_v29, %v1971_v25  ;;  %v641_v33 = vpop.f32.mrb[7].mxu0 }
  0xf4   :  { %977 = vmatmul.mubr.bf16.vlgmr.msra.gmra.mrb[32].mxu1 %v820_v27  ;;  %v760_v35 = vadd.f32 %v2455_v60, %v639_v28  ;;  %v642_v36 = vadd.f32 %v641_v33, %v328_v30 }
  0xf5   :  { %v794_v38 = vmax.f32 %v762_v31, 0.0  ;;  %v763_v39 = vadd.f32 %v2455_v60, %v650_v32  ;;  %986 = vmatprep.mubr.bf16.mxu1 %v2184_v57 }
  0xf6   :  { %v792_v40 = vmax.f32 %v760_v35, 0.0  ;;  %v761_v41 = vadd.f32 %v2455_v60, %v642_v36 }
  0xf7   :  { %v795_v42 = vmax.f32 %v763_v39, 0.0  ;;  %v1974_v43 = vpop.f32.mrb[8].mxu1 }
  0xf8   :  { %v793_v45 = vmax.f32 %v761_v41, 0.0  ;;  %v2014_v46 = vpop.f32.mrb[8].mxu0  ;;  %v341_v47 = vpop.f32.mrb[9].mxu1 }
  0xf9   :  { %v663_v49 = vadd.f32 %v2014_v46, %v1974_v43  ;;  %v654_v50 = vpop.f32.mrb[9].mxu0  ;;  %v1975_v51 = vpop.f32.mrb[10].mxu1  ;;  %v823_v52 = vpack.c.bf16 %v795_v42, %v794_v38 }
  0xfa   :  { %v822_v53 = vpack.c.bf16 %v793_v45, %v792_v40  ;;  %v655_v54 = vadd.f32 %v654_v50, %v341_v47  ;;  %v2015_v55 = vpop.f32.mrb[10].mxu0  ;;  %v344_v56 = vpop.f32.mrb[11].mxu1 }
  0xfb   :  { %v766_v58 = vadd.f32 %v2455_v60, %v663_v49  ;;  %v666_v59 = vadd.f32 %v2015_v55, %v1975_v51  ;;  %v657_v61 = vpop.f32.mrb[11].mxu0 }
  0xfc   :  { %987 = vmatmul.mubr.bf16.gmra.mrb[36].mxu1 %v821_v26  ;;  %v764_v63 = vadd.f32 %v2455_v60, %v655_v54  ;;  %v658_v0 = vadd.f32 %v657_v61, %v344_v56 }
  0xfd   :  { %996 = vmatprep.mubr.bf16.mxu1 %v2184_v57  ;;  %v798_v2 = vmax.f32 %v766_v58, 0.0  ;;  %v767_v3 = vadd.f32 %v2455_v60, %v666_v59 }
  0xfe   :  { %v796_v4 = vmax.f32 %v764_v63, 0.0  ;;  %v765_v5 = vadd.f32 %v2455_v60, %v658_v0 }
  0xff   :  { %v799_v6 = vmax.f32 %v767_v3, 0.0  ;;  %v1978_v7 = vpop.f32.mrb[12].mxu1 }
 0x100   :  { %v797_v8 = vmax.f32 %v765_v5, 0.0  ;;  %v2018_v9 = vpop.f32.mrb[12].mxu0  ;;  %v357_v10 = vpop.f32.mrb[13].mxu1 }
 0x101   :  { %v679_v11 = vadd.f32 %v2018_v9, %v1978_v7  ;;  %v670_v12 = vpop.f32.mrb[13].mxu0  ;;  %v1979_v13 = vpop.f32.mrb[14].mxu1  ;;  %v2504_v14 = vpack.c.bf16 %v799_v6, %v798_v2 }
 0x102   :  { %v824_v15 = vpack.c.bf16 %v797_v8, %v796_v4  ;;  %v671_v16 = vadd.f32 %v670_v12, %v357_v10  ;;  %v2019_v17 = vpop.f32.mrb[14].mxu0  ;;  %v360_v18 = vpop.f32.mrb[15].mxu1 }
 0x103   :  { %v770_v19 = vadd.f32 %v2455_v60, %v679_v11  ;;  %v682_v20 = vadd.f32 %v2019_v17, %v1979_v13  ;;  %v673_v21 = vpop.f32.mrb[15].mxu0 }
 0x104   :  { %997 = vmatmul.mubr.bf16.gmra.mrb[40].mxu1 %v822_v53  ;;  %v768_v22 = vadd.f32 %v2455_v60, %v671_v16  ;;  %v674_v23 = vadd.f32 %v673_v21, %v360_v18 }
 0x105   :  { %1006 = vmatprep.mubr.bf16.mxu1 %v2184_v57  ;;  %v802_v24 = vmax.f32 %v770_v19, 0.0  ;;  %v771_v25 = vadd.f32 %v2455_v60, %v682_v20 }
 0x106   :  { %v800_v26 = vmax.f32 %v768_v22, 0.0  ;;  %v769_v27 = vadd.f32 %v2455_v60, %v674_v23 }
 0x107   :  { %v803_v28 = vmax.f32 %v771_v25, 0.0  ;;  %v1982_v29 = vpop.f32.mrb[16].mxu1 }
 0x108   :  { %v801_v30 = vmax.f32 %v769_v27, 0.0  ;;  %v2022_v31 = vpop.f32.mrb[16].mxu0  ;;  %v373_v32 = vpop.f32.mrb[17].mxu1 }
 0x109   :  { %v695_v33 = vadd.f32 %v2022_v31, %v1982_v29  ;;  %v686_v34 = vpop.f32.mrb[17].mxu0  ;;  %v1983_v35 = vpop.f32.mrb[18].mxu1  ;;  %v2511_v36 = vpack.c.bf16 %v803_v28, %v802_v24 }
 0x10a   :  { %v2513_v37 = vpack.c.bf16 %v801_v30, %v800_v26  ;;  %v687_v38 = vadd.f32 %v686_v34, %v373_v32  ;;  %v2023_v39 = vpop.f32.mrb[18].mxu0  ;;  %v376_v40 = vpop.f32.mrb[19].mxu1 }
 0x10b   :  { %v774_v41 = vadd.f32 %v2455_v60, %v695_v33  ;;  %v698_v42 = vadd.f32 %v2023_v39, %v1983_v35  ;;  %v689_v43 = vpop.f32.mrb[19].mxu0 }
 0x10c   :  { %1007 = vmatmul.mubr.bf16.gmra.mrb[44].mxu1 %v823_v52  ;;  %v772_v44 = vadd.f32 %v2455_v60, %v687_v38  ;;  %v690_v45 = vadd.f32 %v689_v43, %v376_v40 }
 0x10d   :  { %1016 = vmatprep.mubr.bf16.mxu1 %v2184_v57  ;;  %v806_v46 = vmax.f32 %v774_v41, 0.0  ;;  %v775_v47 = vadd.f32 %v2455_v60, %v698_v42 }
 0x10e   :  { %v804_v48 = vmax.f32 %v772_v44, 0.0  ;;  %v773_v49 = vadd.f32 %v2455_v60, %v690_v45 }
 0x10f   :  { %v807_v50 = vmax.f32 %v775_v47, 0.0  ;;  %v1986_v51 = vpop.f32.mrb[20].mxu1 }
 0x110   :  { %v805_v53 = vmax.f32 %v773_v49, 0.0  ;;  %v2026_v54 = vpop.f32.mrb[20].mxu0  ;;  %v389_v55 = vpop.f32.mrb[21].mxu1 }
 0x111   :  { %v711_v56 = vadd.f32 %v2026_v54, %v1986_v51  ;;  %v702_v58 = vpop.f32.mrb[21].mxu0  ;;  %v1987_v59 = vpop.f32.mrb[22].mxu1  ;;  %v2520_v52 = vpack.c.bf16 %v807_v50, %v806_v46 }
 0x112   :  { %v2522_v61 = vpack.c.bf16 %v805_v53, %v804_v48  ;;  %v703_v62 = vadd.f32 %v702_v58, %v389_v55  ;;  %v2027_v63 = vpop.f32.mrb[22].mxu0  ;;  %v392_v0 = vpop.f32.mrb[23].mxu1 }
 0x113   :  { %v778_v1 = vadd.f32 %v2455_v60, %v711_v56  ;;  %v714_v2 = vadd.f32 %v2027_v63, %v1987_v59  ;;  %v705_v3 = vpop.f32.mrb[23].mxu0 }
 0x114   :  { %1017 = vmatmul.mubr.bf16.gmra.mrb[48].mxu1 %v824_v15  ;;  %v776_v4 = vadd.f32 %v2455_v60, %v703_v62  ;;  %v706_v5 = vadd.f32 %v705_v3, %v392_v0  ;;  %v854_v0 = vlaneseq  ;;  %v852_v3 = vld [vmem:[%s2735_s6] sm:$0x3] }
 0x115   :  { %1026 = vmatprep.mubr.bf16.mxu1 %v2184_v57  ;;  %v810_v6 = vmax.f32 %v778_v1, 0.0  ;;  %v779_v7 = vadd.f32 %v2455_v60, %v714_v2 }
 0x116   :  { %v808_v8 = vmax.f32 %v776_v4, 0.0  ;;  %v777_v9 = vadd.f32 %v2455_v60, %v706_v5  ;;  %v2568_v1 = vshrl.u32 %v854_v0, 7  ;;  %vm1663_vm1 = vcmp.lt.s32.totalorder %v854_v0, 256 }
 0x117   :  { %v811_v10 = vmax.f32 %v779_v7, 0.0  ;;  %v1990_v11 = vpop.f32.mrb[24].mxu1 }
 0x118   :  { %v809_v12 = vmax.f32 %v777_v9, 0.0  ;;  %v2030_v13 = vpop.f32.mrb[24].mxu0  ;;  %v405_v16 = vpop.f32.mrb[25].mxu1  ;;  %v856_v2 = vsub.s32 0, %v2568_v1  ;;  %v860_v4 = vsub.s32 1, %v2568_v1 }
 0x119   :  { %v727_v17 = vadd.f32 %v2030_v13, %v1990_v11  ;;  %v718_v18 = vpop.f32.mrb[25].mxu0  ;;  %v1991_v19 = vpop.f32.mrb[26].mxu1  ;;  %v831_v15 = vpack.c.bf16 %v811_v10, %v810_v6 }
 0x11a   :  { %v830_v20 = vpack.c.bf16 %v809_v12, %v808_v8  ;;  %v719_v21 = vadd.f32 %v718_v18, %v405_v16  ;;  %v2031_v22 = vpop.f32.mrb[26].mxu0  ;;  %v408_v23 = vpop.f32.mrb[27].mxu1  ;;  %v2577_v5 = vrot.slane %v852_v3, %v856_v2  ;;  %v2579_v6 = vrot.slane %v852_v3, %v860_v4 }
 0x11b   :  { %v782_v24 = vadd.f32 %v2455_v60, %v727_v17  ;;  %v730_v25 = vadd.f32 %v2031_v22, %v1991_v19  ;;  %v721_v26 = vpop.f32.mrb[27].mxu0 }
 0x11c   :  { %1027 = vmatmul.mubr.bf16.gmra.mrb[52].mxu1 %v2504_v14  ;;  %v780_v27 = vadd.f32 %v2455_v60, %v719_v21  ;;  %v722_v28 = vadd.f32 %v721_v26, %v408_v23 }
 0x11d   :  { %1036 = vmatprep.mubr.bf16.mxu1 %v2184_v57  ;;  %v814_v29 = vmax.f32 %v782_v24, 0.0  ;;  %v783_v30 = vadd.f32 %v2455_v60, %v730_v25 }
 0x11e   :  { %v812_v31 = vmax.f32 %v780_v27, 0.0  ;;  %v781_v32 = vadd.f32 %v2455_v60, %v722_v28 }
 0x11f   :  { %v815_v33 = vmax.f32 %v783_v30, 0.0  ;;  %v1994_v34 = vpop.f32.mrb[28].mxu1 }
 0x120   :  { %v813_v35 = vmax.f32 %v781_v32, 0.0  ;;  %v2034_v38 = vpop.f32.mrb[28].mxu0  ;;  %v421_v39 = vpop.f32.mrb[29].mxu1 }
 0x121   :  { %v743_v40 = vadd.f32 %v2034_v38, %v1994_v34  ;;  %v734_v41 = vpop.f32.mrb[29].mxu0  ;;  %v1995_v42 = vpop.f32.mrb[30].mxu1  ;;  %v833_v14 = vpack.c.bf16 %v815_v33, %v814_v29 }
 0x122   :  { %v832_v43 = vpack.c.bf16 %v813_v35, %v812_v31  ;;  %v735_v44 = vadd.f32 %v734_v41, %v421_v39  ;;  %v2035_v45 = vpop.f32.mrb[30].mxu0  ;;  %v424_v46 = vpop.f32.mrb[31].mxu1 }
 0x123   :  { %v786_v47 = vadd.f32 %v2455_v60, %v743_v40  ;;  %v746_v48 = vadd.f32 %v2035_v45, %v1995_v42  ;;  %v737_v49 = vpop.f32.mrb[31].mxu0 }
 0x124   :  { %1037 = vmatmul.mubr.bf16.gmra.mrb[56].mxu1 %v2513_v37  ;;  %v784_v50 = vadd.f32 %v2455_v60, %v735_v44  ;;  %v738_v51 = vadd.f32 %v737_v49, %v424_v46  ;;  %v2149_v37 = vld [vmem:[%s2736_s7 + $0x30] sm:$0xff]  }
 0x125   :  { %1046 = vmatprep.mubr.bf16.mxu1 %v2184_v57  ;;  %v818_v53 = vmax.f32 %v786_v47, 0.0  ;;  %v787_v54 = vadd.f32 %v2455_v60, %v746_v48 }
 0x126   :  { %v816_v55 = vmax.f32 %v784_v50, 0.0  ;;  %v785_v56 = vadd.f32 %v2455_v60, %v738_v51  ;;  %v2147_v60 = vld [vmem:[%s2736_s7 + $0x28] sm:$0xff]  }
 0x127   :  { %v819_v58 = vmax.f32 %v787_v54, 0.0  ;;  %1837 = vmatpush3.bf16.msra.mxu0 %v2147_v60 }
 0x128   :  { %v817_v59 = vmax.f32 %v785_v56, 0.0 }
 0x129   :  { %v835_v62 = vpack.c.bf16 %v819_v58, %v818_v53 }
 0x12a   :  { %v834_v63 = vpack.c.bf16 %v817_v59, %v816_v55 }
 0x12c   :  { %1047 = vmatmul.mubr.bf16.gmra.mrb[60].mxu1 %v2511_v36  ;;  %v2148_v36 = vld [vmem:[%s2736_s7 + $0x70] sm:$0xff]  }
 0x12d   :  { %1056 = vmatprep.mubr.bf16.mxu1 %v2184_v57  ;;  %1838 = vmatprep.subr.bf16.mxu0 %v2148_v36 }
 0x12e   :  { %1839 = vmatpush3.bf16.msra.mxu0 %v2149_v37 }
 0x134   :  { %1057 = vmatmul.mubr.bf16.gmra.mrb[64].mxu1 %v2522_v61  ;;  %v2151_v61 = vld [vmem:[%s2736_s7 + $0x38] sm:$0xff]  }
 0x135   :  { %1066 = vmatprep.mubr.bf16.mxu1 %v2184_v57 }
 0x13c   :  { %1067 = vmatmul.mubr.bf16.gmra.mrb[68].mxu1 %v2520_v52  ;;  %v2150_v52 = vld [vmem:[%s2736_s7 + $0x78] sm:$0xff]  }
 0x13d   :  { %1076 = vmatprep.mubr.bf16.mxu1 %v2184_v57  ;;  %1840 = vmatprep.subr.bf16.mxu0 %v2150_v52 }
 0x13e   :  { %1841 = vmatpush3.bf16.msra.mxu0 %v2151_v61 }
 0x144   :  { %1077 = vmatmul.mubr.bf16.gmra.mrb[72].mxu1 %v830_v20 }
 0x145   :  { %1086 = vmatprep.mubr.bf16.mxu1 %v2184_v57 }
 0x14c   :  { %1087 = vmatmul.mubr.bf16.gmra.mrb[76].mxu1 %v831_v15 }
 0x14d   :  { %1096 = vmatprep.mubr.bf16.mxu1 %v2184_v57 }
 0x154   :  { %1097 = vmatmul.mubr.bf16.gmra.mrb[80].mxu1 %v832_v43 }
 0x155   :  { %1106 = vmatprep.mubr.bf16.mxu1 %v2184_v57 }
 0x15c   :  { %1107 = vmatmul.mubr.bf16.gmra.mrb[84].mxu1 %v833_v14 }
 0x15d   :  { %1116 = vmatprep.mubr.bf16.mxu1 %v2184_v57 }
 0x164   :  { %1117 = vmatmul.mubr.bf16.gmra.mrb[88].mxu1 %v834_v63 }
 0x165   :  { %1126 = vmatprep.mubr.bf16.mxu1 %v2184_v57 }
 0x16c   :  { %1127 = vmatmul.mubr.bf16.gmra.mrb[92].mxu1 %v835_v62 }
 0x1c7   :  { %v978_v57 = vpop.f32.mrb[32].mxu1 }
 0x1c8   :  { %v979_v7 = vadd.f32 %v978_v57, %v2577_v5  ;;  %v980_v8 = vpop.f32.mrb[33].mxu1 }
 0x1c9   :  { %v981_v9 = vadd.f32 %v980_v8, %v2579_v6  ;;  %v982_v10 = vpop.f32.mrb[34].mxu1 }
 0x1ca   :  { %v983_v11 = vadd.f32 %v982_v10, %v2577_v5  ;;  %v984_v12 = vpop.f32.mrb[35].mxu1  ;;  %v1137_v16 = vmax.f32 %v979_v7, 0.0 }
 0x1cb   :  { %v985_v13 = vadd.f32 %v984_v12, %v2579_v6  ;;  %v1138_v18 = vmax.f32 %v981_v9, 0.0 }
 0x1cc   :  { %v1139_v17 = vmax.f32 %v983_v11, 0.0 }
 0x1cd   :  { %v1140_v19 = vmax.f32 %v985_v13, 0.0 }
 0x1ce   :  { %v1201_v15 = vpack.c.bf16 %v1139_v17, %v1137_v16 }
 0x1cf   :  { %v1202_v20 = vpack.c.bf16 %v1140_v19, %v1138_v18  ;;  %v988_v21 = vpop.f32.mrb[36].mxu1 }
 0x1d0   :  { %v989_v22 = vadd.f32 %v988_v21, %v2577_v5  ;;  %v990_v23 = vpop.f32.mrb[37].mxu1 }
 0x1d1   :  { %v991_v24 = vadd.f32 %v990_v23, %v2579_v6  ;;  %v992_v25 = vpop.f32.mrb[38].mxu1  ;;  %1400 = vmatprep.mubr.bf16.mxu0 %v1202_v20 }
 0x1d2   :  { %v993_v26 = vadd.f32 %v992_v25, %v2577_v5  ;;  %v994_v27 = vpop.f32.mrb[39].mxu1  ;;  %1401 = vmatmul.mubr.bf16.vlgmr.msra.gmra.mrb[32].mxu0 %v1201_v15  ;;  %v1141_v29 = vmax.f32 %v989_v22, 0.0 }
 0x1d3   :  { %v995_v28 = vadd.f32 %v994_v27, %v2579_v6  ;;  %v1142_v31 = vmax.f32 %v991_v24, 0.0 }
 0x1d4   :  { %v1143_v30 = vmax.f32 %v993_v26, 0.0 }
 0x1d5   :  { %v1144_v32 = vmax.f32 %v995_v28, 0.0 }
 0x1d6   :  { %v1203_v33 = vpack.c.bf16 %v1143_v30, %v1141_v29 }
 0x1d7   :  { %v1204_v34 = vpack.c.bf16 %v1144_v32, %v1142_v31  ;;  %v998_v35 = vpop.f32.mrb[40].mxu1 }
 0x1d8   :  { %v999_v38 = vadd.f32 %v998_v35, %v2577_v5  ;;  %v1000_v39 = vpop.f32.mrb[41].mxu1 }
 0x1d9   :  { %v1001_v40 = vadd.f32 %v1000_v39, %v2579_v6  ;;  %v1002_v41 = vpop.f32.mrb[42].mxu1  ;;  %1408 = vmatprep.mubr.bf16.mxu0 %v1204_v34 }
 0x1da   :  { %v1003_v42 = vadd.f32 %v1002_v41, %v2577_v5  ;;  %v1004_v14 = vpop.f32.mrb[43].mxu1  ;;  %1409 = vmatmul.mubr.bf16.gmra.mrb[36].mxu0 %v1203_v33  ;;  %v1145_v44 = vmax.f32 %v999_v38, 0.0 }
 0x1db   :  { %v1005_v43 = vadd.f32 %v1004_v14, %v2579_v6  ;;  %v1146_v46 = vmax.f32 %v1001_v40, 0.0 }
 0x1dc   :  { %v1147_v45 = vmax.f32 %v1003_v42, 0.0 }
 0x1dd   :  { %v1148_v47 = vmax.f32 %v1005_v43, 0.0 }
 0x1de   :  { %v1205_v48 = vpack.c.bf16 %v1147_v45, %v1145_v44 }
 0x1df   :  { %v1206_v49 = vpack.c.bf16 %v1148_v47, %v1146_v46  ;;  %v1008_v50 = vpop.f32.mrb[44].mxu1 }
 0x1e0   :  { %v1009_v51 = vadd.f32 %v1008_v50, %v2577_v5  ;;  %v1010_v53 = vpop.f32.mrb[45].mxu1 }
 0x1e1   :  { %v1011_v54 = vadd.f32 %v1010_v53, %v2579_v6  ;;  %v1012_v55 = vpop.f32.mrb[46].mxu1  ;;  %1416 = vmatprep.mubr.bf16.mxu0 %v1206_v49 }
 0x1e2   :  { %v1013_v56 = vadd.f32 %v1012_v55, %v2577_v5  ;;  %v1014_v58 = vpop.f32.mrb[47].mxu1  ;;  %1417 = vmatmul.mubr.bf16.gmra.mrb[40].mxu0 %v1205_v48  ;;  %v1149_v62 = vmax.f32 %v1009_v51, 0.0 }
 0x1e3   :  { %v1015_v59 = vadd.f32 %v1014_v58, %v2579_v6  ;;  %v1150_v60 = vmax.f32 %v1011_v54, 0.0 }
 0x1e4   :  { %v1151_v63 = vmax.f32 %v1013_v56, 0.0 }
 0x1e5   :  { %v1152_v36 = vmax.f32 %v1015_v59, 0.0 }
 0x1e6   :  { %v1207_v37 = vpack.c.bf16 %v1151_v63, %v1149_v62 }
 0x1e7   :  { %v1208_v52 = vpack.c.bf16 %v1152_v36, %v1150_v60  ;;  %v1018_v61 = vpop.f32.mrb[48].mxu1 }
 0x1e8   :  { %v1019_v3 = vadd.f32 %v1018_v61, %v2577_v5  ;;  %v1020_v4 = vpop.f32.mrb[49].mxu1 }
 0x1e9   :  { %v1021_v57 = vadd.f32 %v1020_v4, %v2579_v6  ;;  %v1022_v7 = vpop.f32.mrb[50].mxu1  ;;  %1424 = vmatprep.mubr.bf16.mxu0 %v1208_v52 }
 0x1ea   :  { %v1023_v8 = vadd.f32 %v1022_v7, %v2577_v5  ;;  %v1024_v9 = vpop.f32.mrb[51].mxu1  ;;  %1425 = vmatmul.mubr.bf16.gmra.mrb[44].mxu0 %v1207_v37  ;;  %v1153_v11 = vmax.f32 %v1019_v3, 0.0 }
 0x1eb   :  { %v1025_v10 = vadd.f32 %v1024_v9, %v2579_v6  ;;  %v1154_v13 = vmax.f32 %v1021_v57, 0.0 }
 0x1ec   :  { %v1155_v12 = vmax.f32 %v1023_v8, 0.0 }
 0x1ed   :  { %v1156_v16 = vmax.f32 %v1025_v10, 0.0 }
 0x1ee   :  { %v1209_v17 = vpack.c.bf16 %v1155_v12, %v1153_v11 }
 0x1ef   :  { %v1210_v18 = vpack.c.bf16 %v1156_v16, %v1154_v13  ;;  %v1028_v19 = vpop.f32.mrb[52].mxu1 }
 0x1f0   :  { %v1029_v15 = vadd.f32 %v1028_v19, %v2577_v5  ;;  %v1030_v20 = vpop.f32.mrb[53].mxu1 }
 0x1f1   :  { %v1031_v21 = vadd.f32 %v1030_v20, %v2579_v6  ;;  %v1032_v22 = vpop.f32.mrb[54].mxu1  ;;  %1432 = vmatprep.mubr.bf16.mxu0 %v1210_v18 }
 0x1f2   :  { %v1033_v23 = vadd.f32 %v1032_v22, %v2577_v5  ;;  %v1034_v24 = vpop.f32.mrb[55].mxu1  ;;  %1433 = vmatmul.mubr.bf16.gmra.mrb[48].mxu0 %v1209_v17  ;;  %v1157_v26 = vmax.f32 %v1029_v15, 0.0 }
 0x1f3   :  { %v1035_v25 = vadd.f32 %v1034_v24, %v2579_v6  ;;  %v1158_v28 = vmax.f32 %v1031_v21, 0.0 }
 0x1f4   :  { %v1159_v27 = vmax.f32 %v1033_v23, 0.0 }
 0x1f5   :  { %v1160_v29 = vmax.f32 %v1035_v25, 0.0 }
 0x1f6   :  { %v1211_v30 = vpack.c.bf16 %v1159_v27, %v1157_v26 }
 0x1f7   :  { %v1212_v31 = vpack.c.bf16 %v1160_v29, %v1158_v28  ;;  %v1038_v32 = vpop.f32.mrb[56].mxu1 }
 0x1f8   :  { %v1039_v33 = vadd.f32 %v1038_v32, %v2577_v5  ;;  %v1040_v34 = vpop.f32.mrb[57].mxu1 }
 0x1f9   :  { %v1041_v35 = vadd.f32 %v1040_v34, %v2579_v6  ;;  %v1042_v38 = vpop.f32.mrb[58].mxu1  ;;  %1440 = vmatprep.mubr.bf16.mxu0 %v1212_v31 }
 0x1fa   :  { %v1043_v39 = vadd.f32 %v1042_v38, %v2577_v5  ;;  %v1044_v40 = vpop.f32.mrb[59].mxu1  ;;  %1441 = vmatmul.mubr.bf16.gmra.mrb[52].mxu0 %v1211_v30  ;;  %v1161_v42 = vmax.f32 %v1039_v33, 0.0 }
 0x1fb   :  { %v1045_v41 = vadd.f32 %v1044_v40, %v2579_v6  ;;  %v1162_v43 = vmax.f32 %v1041_v35, 0.0 }
 0x1fc   :  { %v1163_v14 = vmax.f32 %v1043_v39, 0.0 }
 0x1fd   :  { %v1164_v44 = vmax.f32 %v1045_v41, 0.0 }
 0x1fe   :  { %v1213_v45 = vpack.c.bf16 %v1163_v14, %v1161_v42 }
 0x1ff   :  { %v1214_v46 = vpack.c.bf16 %v1164_v44, %v1162_v43  ;;  %v1048_v47 = vpop.f32.mrb[60].mxu1 }
 0x200   :  { %v1049_v48 = vadd.f32 %v1048_v47, %v2577_v5  ;;  %v1050_v49 = vpop.f32.mrb[61].mxu1 }
 0x201   :  { %v1051_v50 = vadd.f32 %v1050_v49, %v2579_v6  ;;  %v1052_v51 = vpop.f32.mrb[62].mxu1  ;;  %1448 = vmatprep.mubr.bf16.mxu0 %v1214_v46 }
 0x202   :  { %v1053_v53 = vadd.f32 %v1052_v51, %v2577_v5  ;;  %v1054_v54 = vpop.f32.mrb[63].mxu1  ;;  %1449 = vmatmul.mubr.bf16.gmra.mrb[56].mxu0 %v1213_v45  ;;  %v1165_v56 = vmax.f32 %v1049_v48, 0.0 }
 0x203   :  { %v1055_v55 = vadd.f32 %v1054_v54, %v2579_v6  ;;  %v1166_v59 = vmax.f32 %v1051_v50, 0.0 }
 0x204   :  { %v1167_v58 = vmax.f32 %v1053_v53, 0.0 }
 0x205   :  { %v1168_v62 = vmax.f32 %v1055_v55, 0.0 }
 0x206   :  { %v1215_v63 = vpack.c.bf16 %v1167_v58, %v1165_v56 }
 0x207   :  { %v1216_v60 = vpack.c.bf16 %v1168_v62, %v1166_v59  ;;  %v1058_v36 = vpop.f32.mrb[64].mxu1 }
 0x208   :  { %v1059_v37 = vadd.f32 %v1058_v36, %v2577_v5  ;;  %v1060_v52 = vpop.f32.mrb[65].mxu1 }
 0x209   :  { %v1061_v61 = vadd.f32 %v1060_v52, %v2579_v6  ;;  %v1062_v3 = vpop.f32.mrb[66].mxu1  ;;  %1456 = vmatprep.mubr.bf16.mxu0 %v1216_v60 }
 0x20a   :  { %v1063_v4 = vadd.f32 %v1062_v3, %v2577_v5  ;;  %v1064_v57 = vpop.f32.mrb[67].mxu1  ;;  %1457 = vmatmul.mubr.bf16.gmra.mrb[60].mxu0 %v1215_v63  ;;  %v1169_v8 = vmax.f32 %v1059_v37, 0.0 }
 0x20b   :  { %v1065_v7 = vadd.f32 %v1064_v57, %v2579_v6  ;;  %v1170_v10 = vmax.f32 %v1061_v61, 0.0 }
 0x20c   :  { %v1171_v9 = vmax.f32 %v1063_v4, 0.0 }
 0x20d   :  { %v1172_v11 = vmax.f32 %v1065_v7, 0.0 }
 0x20e   :  { %v1217_v12 = vpack.c.bf16 %v1171_v9, %v1169_v8 }
 0x20f   :  { %v1218_v13 = vpack.c.bf16 %v1172_v11, %v1170_v10  ;;  %v1068_v16 = vpop.f32.mrb[68].mxu1 }
 0x210   :  { %v1069_v17 = vadd.f32 %v1068_v16, %v2577_v5  ;;  %v1070_v18 = vpop.f32.mrb[69].mxu1 }
 0x211   :  { %v1071_v19 = vadd.f32 %v1070_v18, %v2579_v6  ;;  %v1072_v15 = vpop.f32.mrb[70].mxu1  ;;  %1464 = vmatprep.mubr.bf16.mxu0 %v1218_v13 }
 0x212   :  { %v1073_v20 = vadd.f32 %v1072_v15, %v2577_v5  ;;  %v1074_v21 = vpop.f32.mrb[71].mxu1  ;;  %1465 = vmatmul.mubr.bf16.gmra.mrb[64].mxu0 %v1217_v12  ;;  %v1173_v23 = vmax.f32 %v1069_v17, 0.0 }
 0x213   :  { %v1075_v22 = vadd.f32 %v1074_v21, %v2579_v6  ;;  %v1174_v25 = vmax.f32 %v1071_v19, 0.0 }
 0x214   :  { %v1175_v24 = vmax.f32 %v1073_v20, 0.0 }
 0x215   :  { %v1176_v26 = vmax.f32 %v1075_v22, 0.0 }
 0x216   :  { %v1219_v27 = vpack.c.bf16 %v1175_v24, %v1173_v23 }
 0x217   :  { %v1220_v28 = vpack.c.bf16 %v1176_v26, %v1174_v25  ;;  %v1078_v29 = vpop.f32.mrb[72].mxu1 }
 0x218   :  { %v1079_v30 = vadd.f32 %v1078_v29, %v2577_v5  ;;  %v1080_v31 = vpop.f32.mrb[73].mxu1 }
 0x219   :  { %v1081_v32 = vadd.f32 %v1080_v31, %v2579_v6  ;;  %v1082_v33 = vpop.f32.mrb[74].mxu1  ;;  %1472 = vmatprep.mubr.bf16.mxu0 %v1220_v28 }
 0x21a   :  { %v1083_v34 = vadd.f32 %v1082_v33, %v2577_v5  ;;  %v1084_v35 = vpop.f32.mrb[75].mxu1  ;;  %1473 = vmatmul.mubr.bf16.gmra.mrb[68].mxu0 %v1219_v27  ;;  %v1177_v39 = vmax.f32 %v1079_v30, 0.0 }
 0x21b   :  { %v1085_v38 = vadd.f32 %v1084_v35, %v2579_v6  ;;  %v1178_v41 = vmax.f32 %v1081_v32, 0.0 }
 0x21c   :  { %v1179_v40 = vmax.f32 %v1083_v34, 0.0 }
 0x21d   :  { %v1180_v42 = vmax.f32 %v1085_v38, 0.0 }
 0x21e   :  { %v1221_v14 = vpack.c.bf16 %v1179_v40, %v1177_v39 }
 0x21f   :  { %v1222_v43 = vpack.c.bf16 %v1180_v42, %v1178_v41  ;;  %v1088_v44 = vpop.f32.mrb[76].mxu1 }
 0x220   :  { %v1089_v45 = vadd.f32 %v1088_v44, %v2577_v5  ;;  %v1090_v46 = vpop.f32.mrb[77].mxu1 }
 0x221   :  { %v1091_v47 = vadd.f32 %v1090_v46, %v2579_v6  ;;  %v1092_v48 = vpop.f32.mrb[78].mxu1  ;;  %1480 = vmatprep.mubr.bf16.mxu0 %v1222_v43 }
 0x222   :  { %v1093_v49 = vadd.f32 %v1092_v48, %v2577_v5  ;;  %v1094_v50 = vpop.f32.mrb[79].mxu1  ;;  %1481 = vmatmul.mubr.bf16.gmra.mrb[72].mxu0 %v1221_v14  ;;  %v1181_v53 = vmax.f32 %v1089_v45, 0.0 }
 0x223   :  { %v1095_v51 = vadd.f32 %v1094_v50, %v2579_v6  ;;  %v1182_v55 = vmax.f32 %v1091_v47, 0.0 }
 0x224   :  { %v1183_v54 = vmax.f32 %v1093_v49, 0.0 }
 0x225   :  { %v1184_v56 = vmax.f32 %v1095_v51, 0.0 }
 0x226   :  { %v1223_v58 = vpack.c.bf16 %v1183_v54, %v1181_v53 }
 0x227   :  { %v1224_v59 = vpack.c.bf16 %v1184_v56, %v1182_v55  ;;  %v1098_v62 = vpop.f32.mrb[80].mxu1 }
 0x228   :  { %v1099_v63 = vadd.f32 %v1098_v62, %v2577_v5  ;;  %v1100_v60 = vpop.f32.mrb[81].mxu1 }
 0x229   :  { %v1101_v36 = vadd.f32 %v1100_v60, %v2579_v6  ;;  %v1102_v37 = vpop.f32.mrb[82].mxu1  ;;  %1488 = vmatprep.mubr.bf16.mxu0 %v1224_v59 }
 0x22a   :  { %v1103_v52 = vadd.f32 %v1102_v37, %v2577_v5  ;;  %v1104_v61 = vpop.f32.mrb[83].mxu1  ;;  %1489 = vmatmul.mubr.bf16.gmra.mrb[76].mxu0 %v1223_v58  ;;  %v1185_v4 = vmax.f32 %v1099_v63, 0.0  ;;  %v2648_v58 = vld [vmem:[%s2737_s8] ss:$0 sm:$0xff]  ;;  %s2186_s8 = smov [#allocation3]  }
 0x22b   :  { %v1105_v3 = vadd.f32 %v1104_v61, %v2579_v6  ;;  %v1186_v7 = vmax.f32 %v1101_v36, 0.0  ;;  %v2654_v36 = vld [vmem:[%s2738_s9] sm:$0x1]  ;;  %s1672_s9 = sshll.u32 %s2186_s8, 4  ;;  %s1673_s9 = int_to_ptr.vmem [resolvable:$true] %s1672_s9 }
 0x22c   :  { %v1187_v57 = vmax.f32 %v1103_v52, 0.0  ;;  %1954 = vmatprep.mubr.bf16.mxu1 %v2654_v36  ;;  %s2160_s28 = scalar_lea.vmem %s1673_s9, 32  ;;  %p2165_p1 = scmp.lt.s32.totalorder %s1673_s9, %s1673_s9 }
 0x22d   :  { %v1188_v8 = vmax.f32 %v1105_v3, 0.0  ;;  %p2161_p0 = scmp.ne.s32.totalorder %s1673_s9, %s2160_s28  ;;  %p2166_p2 = scmp.lt.s32.totalorder %s2160_s28, %s2160_s28 }
 0x22e   :  { %v1225_v9 = vpack.c.bf16 %v1187_v57, %v1185_v4 }
 0x22f   :  { %v1226_v10 = vpack.c.bf16 %v1188_v8, %v1186_v7  ;;  %v1108_v11 = vpop.f32.mrb[84].mxu1  ;;  %p2167_p3 = por %p2166_p2, %p2165_p1 }
 0x230   :  { %v1109_v12 = vadd.f32 %v1108_v11, %v2577_v5  ;;  %v1110_v13 = vpop.f32.mrb[85].mxu1 }
 0x231   :  { %v1111_v16 = vadd.f32 %v1110_v13, %v2579_v6  ;;  %v1112_v17 = vpop.f32.mrb[86].mxu1  ;;  %1496 = vmatprep.mubr.bf16.mxu0 %v1226_v10  ;;  %p2168_p4 = pnand %p2167_p3, %p2161_p0 }
 0x232   :  { %v1113_v18 = vadd.f32 %v1112_v17, %v2577_v5  ;;  %v1114_v19 = vpop.f32.mrb[87].mxu1  ;;  %1497 = vmatmul.mubr.bf16.gmra.mrb[80].mxu0 %v1225_v9  ;;  %v1189_v20 = vmax.f32 %v1109_v12, 0.0  ;;  %v1578_v12 = vld [vmem:[#allocation2] sm:$0x1] }
 0x233   :  { %v1115_v15 = vadd.f32 %v1114_v19, %v2579_v6  ;;  %v1190_v22 = vmax.f32 %v1111_v16, 0.0  ;;  %1581 = vperm.xlu0 %2071, %v1578_v12  }
 0x234   :  { %v1191_v21 = vmax.f32 %v1113_v18, 0.0 }
 0x235   :  { %v1192_v23 = vmax.f32 %v1115_v15, 0.0 }
 0x236   :  { %v1227_v24 = vpack.c.bf16 %v1191_v21, %v1189_v20 }
 0x237   :  { %v1228_v25 = vpack.c.bf16 %v1192_v23, %v1190_v22  ;;  %v1118_v26 = vpop.f32.mrb[88].mxu1 }
 0x238   :  { %v1119_v27 = vadd.f32 %v1118_v26, %v2577_v5  ;;  %v1120_v28 = vpop.f32.mrb[89].mxu1 }
 0x239   :  { %v1121_v29 = vadd.f32 %v1120_v28, %v2579_v6  ;;  %v1122_v30 = vpop.f32.mrb[90].mxu1  ;;  %1504 = vmatprep.mubr.bf16.mxu0 %v1228_v25 }
 0x23a   :  { %v1123_v31 = vadd.f32 %v1122_v30, %v2577_v5  ;;  %v1124_v32 = vpop.f32.mrb[91].mxu1  ;;  %1505 = vmatmul.mubr.bf16.gmra.mrb[84].mxu0 %v1227_v24  ;;  %v1193_v34 = vmax.f32 %v1119_v27, 0.0 }
 0x23b   :  { %v1125_v33 = vadd.f32 %v1124_v32, %v2579_v6  ;;  %v1194_v38 = vmax.f32 %v1121_v29, 0.0 }
 0x23c   :  { %v1195_v35 = vmax.f32 %v1123_v31, 0.0 }
 0x23d   :  { %v1196_v39 = vmax.f32 %v1125_v33, 0.0 }
 0x23e   :  { %v1229_v40 = vpack.c.bf16 %v1195_v35, %v1193_v34 }
 0x23f   :  { %v1230_v41 = vpack.c.bf16 %v1196_v39, %v1194_v38  ;;  %v1128_v42 = vpop.f32.mrb[92].mxu1 }
 0x240   :  { %v1129_v14 = vadd.f32 %v1128_v42, %v2577_v5  ;;  %v1130_v43 = vpop.f32.mrb[93].mxu1 }
 0x241   :  { %v1131_v44 = vadd.f32 %v1130_v43, %v2579_v6  ;;  %v1132_v45 = vpop.f32.mrb[94].mxu1  ;;  %1512 = vmatprep.mubr.bf16.mxu0 %v1230_v41 }
 0x242   :  { %v1133_v46 = vadd.f32 %v1132_v45, %v2577_v5  ;;  %v1134_v47 = vpop.f32.mrb[95].mxu1  ;;  %1513 = vmatmul.mubr.bf16.gmra.mrb[88].mxu0 %v1229_v40  ;;  %v1197_v49 = vmax.f32 %v1129_v14, 0.0 }
 0x243   :  { %v1135_v48 = vadd.f32 %v1134_v47, %v2579_v6  ;;  %v1198_v51 = vmax.f32 %v1131_v44, 0.0 }
 0x244   :  { %v1199_v50 = vmax.f32 %v1133_v46, 0.0 }
 0x245   :  { %v1200_v53 = vmax.f32 %v1135_v48, 0.0 }
 0x246   :  { %v1231_v54 = vpack.c.bf16 %v1199_v50, %v1197_v49 }
 0x247   :  { %v1232_v55 = vpack.c.bf16 %v1200_v53, %v1198_v51 }
 0x249   :  { %1520 = vmatprep.mubr.bf16.mxu0 %v1232_v55 }
 0x24a   :  { %1521 = vmatmul.mubr.bf16.gmra.mrb[92].mxu0 %v1231_v54 }
 0x2a5   :  { %v1842_v56 = vpop.f32.mrb[32].mxu0 }
 0x2a6   :  { %v1843_v59 = vpop.f32.mrb[33].mxu0 }
 0x2a7   :  { %v1844_v5 = vadd.f32 %v1843_v59, %v1842_v56  ;;  %v1845_v62 = vpop.f32.mrb[34].mxu0 }
 0x2a8   :  { %v1846_v63 = vpop.f32.mrb[35].mxu0 }
 0x2a9   :  { %v1403_v6 = vadd.f32 %v1844_v5, %v2648_v58  ;;  %v1847_v60 = vadd.f32 %v1846_v63, %v1845_v62 }
 0x2ab   :  { %v1406_v37 = vadd.f32 %v1847_v60, %v2648_v58  ;;  %v1529_v52 = vmax.f32 %v1403_v6, 0.0 }
 0x2ad   :  { %v1530_v61 = vmax.f32 %v1406_v37, 0.0  ;;  %v1848_v3 = vpop.f32.mrb[36].mxu0 }
 0x2ae   :  { %v1849_v4 = vpop.f32.mrb[37].mxu0 }
 0x2af   :  { %v2658_v57 = vpack.c.bf16 %v1530_v61, %v1529_v52  ;;  %v1850_v7 = vadd.f32 %v1849_v4, %v1848_v3  ;;  %v1851_v8 = vpop.f32.mrb[38].mxu0 }
 0x2b0   :  { %v1852_v9 = vpop.f32.mrb[39].mxu0 }
 0x2b1   :  { %v1411_v10 = vadd.f32 %v1850_v7, %v2648_v58  ;;  %v1853_v11 = vadd.f32 %v1852_v9, %v1851_v8 }
 0x2b3   :  { %v1414_v13 = vadd.f32 %v1853_v11, %v2648_v58  ;;  %v1531_v16 = vmax.f32 %v1411_v10, 0.0 }
 0x2b5   :  { %v1532_v17 = vmax.f32 %v1414_v13, 0.0  ;;  %v1854_v18 = vpop.f32.mrb[40].mxu0 }
 0x2b6   :  { %v1855_v19 = vpop.f32.mrb[41].mxu0 }
 0x2b7   :  { %v2662_v15 = vpack.c.bf16 %v1532_v17, %v1531_v16  ;;  %v1856_v20 = vadd.f32 %v1855_v19, %v1854_v18  ;;  %v1857_v21 = vpop.f32.mrb[42].mxu0 }
 0x2b8   :  { %v1858_v22 = vpop.f32.mrb[43].mxu0 }
 0x2b9   :  { %v1419_v23 = vadd.f32 %v1856_v20, %v2648_v58  ;;  %v1859_v24 = vadd.f32 %v1858_v22, %v1857_v21 }
 0x2bb   :  { %v1422_v25 = vadd.f32 %v1859_v24, %v2648_v58  ;;  %v1533_v26 = vmax.f32 %v1419_v23, 0.0 }
 0x2bd   :  { %v1534_v27 = vmax.f32 %v1422_v25, 0.0  ;;  %v1860_v28 = vpop.f32.mrb[44].mxu0 }
 0x2be   :  { %v1861_v29 = vpop.f32.mrb[45].mxu0 }
 0x2bf   :  { %v2666_v30 = vpack.c.bf16 %v1534_v27, %v1533_v26  ;;  %v1862_v31 = vadd.f32 %v1861_v29, %v1860_v28  ;;  %v1863_v32 = vpop.f32.mrb[46].mxu0 }
 0x2c0   :  { %v1864_v33 = vpop.f32.mrb[47].mxu0 }
 0x2c1   :  { %v1427_v34 = vadd.f32 %v1862_v31, %v2648_v58  ;;  %v1865_v35 = vadd.f32 %v1864_v33, %v1863_v32 }
 0x2c3   :  { %v1430_v38 = vadd.f32 %v1865_v35, %v2648_v58  ;;  %v1535_v39 = vmax.f32 %v1427_v34, 0.0 }
 0x2c5   :  { %v1536_v40 = vmax.f32 %v1430_v38, 0.0  ;;  %v1866_v41 = vpop.f32.mrb[48].mxu0 }
 0x2c6   :  { %v1867_v42 = vpop.f32.mrb[49].mxu0 }
 0x2c7   :  { %v2670_v14 = vpack.c.bf16 %v1536_v40, %v1535_v39  ;;  %v1868_v43 = vadd.f32 %v1867_v42, %v1866_v41  ;;  %v1869_v44 = vpop.f32.mrb[50].mxu0 }
 0x2c8   :  { %v1870_v45 = vpop.f32.mrb[51].mxu0 }
 0x2c9   :  { %v1435_v46 = vadd.f32 %v1868_v43, %v2648_v58  ;;  %v1871_v47 = vadd.f32 %v1870_v45, %v1869_v44 }
 0x2cb   :  { %v1438_v48 = vadd.f32 %v1871_v47, %v2648_v58  ;;  %v1537_v49 = vmax.f32 %v1435_v46, 0.0 }
 0x2cd   :  { %v1538_v50 = vmax.f32 %v1438_v48, 0.0  ;;  %v1872_v51 = vpop.f32.mrb[52].mxu0 }
 0x2ce   :  { %v1873_v53 = vpop.f32.mrb[53].mxu0 }
 0x2cf   :  { %v2674_v54 = vpack.c.bf16 %v1538_v50, %v1537_v49  ;;  %v1874_v55 = vadd.f32 %v1873_v53, %v1872_v51  ;;  %v1875_v56 = vpop.f32.mrb[54].mxu0 }
 0x2d0   :  { %v1876_v59 = vpop.f32.mrb[55].mxu0 }
 0x2d1   :  { %v1443_v5 = vadd.f32 %v1874_v55, %v2648_v58  ;;  %v1877_v62 = vadd.f32 %v1876_v59, %v1875_v56 }
 0x2d3   :  { %v1446_v63 = vadd.f32 %v1877_v62, %v2648_v58  ;;  %v1539_v6 = vmax.f32 %v1443_v5, 0.0 }
 0x2d5   :  { %v1540_v60 = vmax.f32 %v1446_v63, 0.0  ;;  %v1878_v37 = vpop.f32.mrb[56].mxu0 }
 0x2d6   :  { %v1879_v52 = vpop.f32.mrb[57].mxu0 }
 0x2d7   :  { %v2678_v61 = vpack.c.bf16 %v1540_v60, %v1539_v6  ;;  %v1880_v3 = vadd.f32 %v1879_v52, %v1878_v37  ;;  %v1881_v4 = vpop.f32.mrb[58].mxu0 }
 0x2d8   :  { %v1882_v7 = vpop.f32.mrb[59].mxu0 }
 0x2d9   :  { %v1451_v8 = vadd.f32 %v1880_v3, %v2648_v58  ;;  %v1883_v9 = vadd.f32 %v1882_v7, %v1881_v4 }
 0x2db   :  { %v1454_v10 = vadd.f32 %v1883_v9, %v2648_v58  ;;  %v1541_v11 = vmax.f32 %v1451_v8, 0.0 }
 0x2dd   :  { %v1542_v12 = vmax.f32 %v1454_v10, 0.0  ;;  %v1884_v13 = vpop.f32.mrb[60].mxu0 }
 0x2de   :  { %v1885_v16 = vpop.f32.mrb[61].mxu0 }
 0x2df   :  { %v2682_v17 = vpack.c.bf16 %v1542_v12, %v1541_v11  ;;  %v1886_v18 = vadd.f32 %v1885_v16, %v1884_v13  ;;  %v1887_v19 = vpop.f32.mrb[62].mxu0 }
 0x2e0   :  { %v1888_v20 = vpop.f32.mrb[63].mxu0 }
 0x2e1   :  { %v1459_v21 = vadd.f32 %v1886_v18, %v2648_v58  ;;  %v1889_v22 = vadd.f32 %v1888_v20, %v1887_v19 }
 0x2e3   :  { %v1462_v23 = vadd.f32 %v1889_v22, %v2648_v58  ;;  %v1543_v24 = vmax.f32 %v1459_v21, 0.0 }
 0x2e5   :  { %v1544_v25 = vmax.f32 %v1462_v23, 0.0  ;;  %v1890_v26 = vpop.f32.mrb[64].mxu0 }
 0x2e6   :  { %v1891_v27 = vpop.f32.mrb[65].mxu0 }
 0x2e7   :  { %v2686_v28 = vpack.c.bf16 %v1544_v25, %v1543_v24  ;;  %v1892_v29 = vadd.f32 %v1891_v27, %v1890_v26  ;;  %v1893_v31 = vpop.f32.mrb[66].mxu0 }
 0x2e8   :  { %v1894_v32 = vpop.f32.mrb[67].mxu0 }
 0x2e9   :  { %v1467_v33 = vadd.f32 %v1892_v29, %v2648_v58  ;;  %v1895_v34 = vadd.f32 %v1894_v32, %v1893_v31 }
 0x2eb   :  { %v1470_v35 = vadd.f32 %v1895_v34, %v2648_v58  ;;  %v1545_v38 = vmax.f32 %v1467_v33, 0.0 }
 0x2ed   :  { %v1546_v39 = vmax.f32 %v1470_v35, 0.0  ;;  %v1896_v40 = vpop.f32.mrb[68].mxu0 }
 0x2ee   :  { %v1897_v41 = vpop.f32.mrb[69].mxu0 }
 0x2ef   :  { %v1898_v42 = vadd.f32 %v1897_v41, %v1896_v40  ;;  %v1899_v43 = vpop.f32.mrb[70].mxu0  ;;  %v1570_v44 = vpack.c.bf16 %v1546_v39, %v1545_v38 }
 0x2f0   :  { %v1900_v45 = vpop.f32.mrb[71].mxu0 }
 0x2f1   :  { %v1475_v46 = vadd.f32 %v1898_v42, %v2648_v58  ;;  %v1901_v47 = vadd.f32 %v1900_v45, %v1899_v43  ;;  %1938 = vmatprep.subr.bf16.mxu1 %v1570_v44 }
 0x2f2   :  { %1939 = vmatpush3.bf16.xpose.msra.mxu1 %v2658_v57 }
 0x2f3   :  { %v1478_v48 = vadd.f32 %v1901_v47, %v2648_v58  ;;  %v1547_v49 = vmax.f32 %v1475_v46, 0.0 }
 0x2f5   :  { %v1548_v50 = vmax.f32 %v1478_v48, 0.0  ;;  %v1902_v51 = vpop.f32.mrb[72].mxu0 }
 0x2f6   :  { %v1903_v53 = vpop.f32.mrb[73].mxu0 }
 0x2f7   :  { %v1904_v55 = vadd.f32 %v1903_v53, %v1902_v51  ;;  %v1905_v56 = vpop.f32.mrb[74].mxu0  ;;  %v1571_v59 = vpack.c.bf16 %v1548_v50, %v1547_v49 }
 0x2f8   :  { %v1906_v5 = vpop.f32.mrb[75].mxu0 }
 0x2f9   :  { %v1483_v62 = vadd.f32 %v1904_v55, %v2648_v58  ;;  %v1907_v63 = vadd.f32 %v1906_v5, %v1905_v56  ;;  %1940 = vmatprep.subr.bf16.mxu1 %v1571_v59 }
 0x2fa   :  { %1941 = vmatpush3.bf16.xpose.msra.mxu1 %v2662_v15 }
 0x2fb   :  { %v1486_v6 = vadd.f32 %v1907_v63, %v2648_v58  ;;  %v1549_v60 = vmax.f32 %v1483_v62, 0.0 }
 0x2fd   :  { %v1550_v57 = vmax.f32 %v1486_v6, 0.0  ;;  %v1908_v37 = vpop.f32.mrb[76].mxu0 }
 0x2fe   :  { %v1909_v52 = vpop.f32.mrb[77].mxu0 }
 0x2ff   :  { %v1910_v3 = vadd.f32 %v1909_v52, %v1908_v37  ;;  %v1911_v4 = vpop.f32.mrb[78].mxu0  ;;  %v1572_v7 = vpack.c.bf16 %v1550_v57, %v1549_v60  ;;  %v1582_v57 = vpop.permute.xlu0 %1581 }
 0x300   :  { %v1912_v8 = vpop.f32.mrb[79].mxu0  ;;  %v1587_v37 = vrot.slane %v1582_v57, %v856_v2 }
 0x301   :  { %v1491_v9 = vadd.f32 %v1910_v3, %v2648_v58  ;;  %v1913_v10 = vadd.f32 %v1912_v8, %v1911_v4  ;;  %1942 = vmatprep.subr.bf16.mxu1 %v1572_v7 }
 0x302   :  { %1943 = vmatpush3.bf16.xpose.msra.mxu1 %v2666_v30 }
 0x303   :  { %v1494_v11 = vadd.f32 %v1913_v10, %v2648_v58  ;;  %v1551_v12 = vmax.f32 %v1491_v9, 0.0 }
 0x305   :  { %v1552_v15 = vmax.f32 %v1494_v11, 0.0  ;;  %v1914_v13 = vpop.f32.mrb[80].mxu0 }
 0x306   :  { %v1915_v16 = vpop.f32.mrb[81].mxu0 }
 0x307   :  { %v1916_v18 = vadd.f32 %v1915_v16, %v1914_v13  ;;  %v1917_v19 = vpop.f32.mrb[82].mxu0  ;;  %v1573_v20 = vpack.c.bf16 %v1552_v15, %v1551_v12  ;;  %v2185_v13 = vmov 1966171168  }
 0x308   :  { %v1918_v21 = vpop.f32.mrb[83].mxu0  ;;  %v1647_v2 = vunpack.c.l.s4 %v2185_v13 }
 0x309   :  { %v1499_v22 = vadd.f32 %v1916_v18, %v2648_v58  ;;  %v1919_v23 = vadd.f32 %v1918_v21, %v1917_v19  ;;  %1944 = vmatprep.subr.bf16.mxu1 %v1573_v20 }
 0x30a   :  { %1945 = vmatpush3.bf16.xpose.msra.mxu1 %v2670_v14  ;;  %v1648_v18 = vunpack.c.0.s8 %v1647_v2 }
 0x30b   :  { %v1502_v24 = vadd.f32 %v1919_v23, %v2648_v58  ;;  %v1553_v25 = vmax.f32 %v1499_v22, 0.0 }
 0x30d   :  { %v1554_v30 = vmax.f32 %v1502_v24, 0.0  ;;  %v1920_v26 = vpop.f32.mrb[84].mxu0  ;;  %v1651_v24 = vsub.s32 %v1648_v18, %v2568_v1 }
 0x30e   :  { %v1921_v27 = vpop.f32.mrb[85].mxu0 }
 0x30f   :  { %v1922_v29 = vadd.f32 %v1921_v27, %v1920_v26  ;;  %v1923_v31 = vpop.f32.mrb[86].mxu0  ;;  %v1574_v32 = vpack.c.bf16 %v1554_v30, %v1553_v25 }
 0x310   :  { %v1924_v33 = vpop.f32.mrb[87].mxu0 }
 0x311   :  { %v1507_v34 = vadd.f32 %v1922_v29, %v2648_v58  ;;  %v1925_v35 = vadd.f32 %v1924_v33, %v1923_v31  ;;  %1946 = vmatprep.subr.bf16.mxu1 %v1574_v32 }
 0x312   :  { %1947 = vmatpush3.bf16.xpose.msra.mxu1 %v2674_v54 }
 0x313   :  { %v1510_v38 = vadd.f32 %v1925_v35, %v2648_v58  ;;  %v1555_v39 = vmax.f32 %v1507_v34, 0.0 }
 0x315   :  { %v1556_v14 = vmax.f32 %v1510_v38, 0.0  ;;  %v1926_v40 = vpop.f32.mrb[88].mxu0 }
 0x316   :  { %v1927_v41 = vpop.f32.mrb[89].mxu0 }
 0x317   :  { %v1928_v42 = vadd.f32 %v1927_v41, %v1926_v40  ;;  %v1929_v43 = vpop.f32.mrb[90].mxu0  ;;  %v1575_v44 = vpack.c.bf16 %v1556_v14, %v1555_v39 }
 0x318   :  { %v1930_v45 = vpop.f32.mrb[91].mxu0 }
 0x319   :  { %v1515_v46 = vadd.f32 %v1928_v42, %v2648_v58  ;;  %v1931_v47 = vadd.f32 %v1930_v45, %v1929_v43  ;;  %1948 = vmatprep.subr.bf16.mxu1 %v1575_v44 }
 0x31a   :  { %1949 = vmatpush3.bf16.xpose.msra.mxu1 %v2678_v61 }
 0x31b   :  { %v1518_v48 = vadd.f32 %v1931_v47, %v2648_v58  ;;  %v1557_v49 = vmax.f32 %v1515_v46, 0.0 }
 0x31d   :  { %v1558_v54 = vmax.f32 %v1518_v48, 0.0  ;;  %v1932_v50 = vpop.f32.mrb[92].mxu0 }
 0x31e   :  { %v1933_v51 = vpop.f32.mrb[93].mxu0 }
 0x31f   :  { %v1934_v53 = vadd.f32 %v1933_v51, %v1932_v50  ;;  %v1935_v55 = vpop.f32.mrb[94].mxu0  ;;  %v1576_v56 = vpack.c.bf16 %v1558_v54, %v1557_v49 }
 0x320   :  { %v1936_v59 = vpop.f32.mrb[95].mxu0 }
 0x321   :  { %v1523_v5 = vadd.f32 %v1934_v53, %v2648_v58  ;;  %v1937_v62 = vadd.f32 %v1936_v59, %v1935_v55  ;;  %1950 = vmatprep.subr.bf16.mxu1 %v1576_v56 }
 0x322   :  { %1951 = vmatpush3.bf16.xpose.msra.mxu1 %v2682_v17 }
 0x323   :  { %v1526_v63 = vadd.f32 %v1937_v62, %v2648_v58  ;;  %v1559_v6 = vmax.f32 %v1523_v5, 0.0 }
 0x325   :  { %v1560_v61 = vmax.f32 %v1526_v63, 0.0 }
 0x327   :  { %v1577_v60 = vpack.c.bf16 %v1560_v61, %v1559_v6 }
 0x329   :  { %1952 = vmatprep.subr.bf16.mxu1 %v1577_v60 }
 0x32a   :  { %1953 = vmatpush3.bf16.xpose.msra.mxu1 %v2686_v28 }
 0x331   :  { %1955 = vmatmul.mubr.bf16.vlgmr.msra.gmra.mrb[96].mxu1 %v2654_v36 }
 0x404   :  { %v1622_v52 = vpop.f32.mrb[96].mxu1 }
 0x405   :  { %v1623_v3 = vadd.f32 %v1622_v52, %v1587_v37  ;;  %v1624_v4 = vpop.f32.mrb[97].mxu1 }
 0x406   :  { %v1625_v7 = vadd.f32 %v1624_v4, %v1587_v37  ;;  %v1626_v8 = vpop.f32.mrb[98].mxu1 }
 0x407   :  { %v1629_v17 = vsub.f32 0.0, %v1623_v3  ;;  %v1627_v9 = vpop.f32.mrb[99].mxu1 }
 0x408   :  { %v1630_v58 = vsub.f32 0.0, %v1625_v7 }
 0x409   :  { %v1631_v10 = vmul.f32 1.442695, %v1629_v17 }
 0x40a   :  { %v1633_v11 = vmul.f32 1.442695, %v1630_v58 }
 0x40b   :  { %2152 = vpow2.f32 %v1631_v10 }
 0x40c   :  { %2154 = vpow2.f32 %v1633_v11 }
 0x415   :  { %v2153_v12 = vpop.eup %2152 }
 0x416   :  { %v2155_v28 = vpop.eup %2154  ;;  %v1635_v15 = vadd.f32 1.0, %v2153_v12 }
 0x417   :  { %v1636_v36 = vadd.f32 1.0, %v2155_v28 }
 0x418   :  { %2156 = vrcp.f32 %v1635_v15 }
 0x419   :  { %2158 = vrcp.f32 %v1636_v36 }
 0x422   :  { %v2157_v16 = vpop.eup %2156 }
 0x423   :  { %v2159_v19 = vpop.eup %2158  ;;  %v1639_v20 = vmul.f32 4.0, %v2157_v16 }
 0x424   :  { %v1640_v21 = vmul.f32 4.0, %v2159_v19 }
 0x425   :  { %v1641_v22 = vadd.f32 0.5, %v1639_v20 }
 0x426   :  { %v1642_v23 = vadd.f32 0.5, %v1640_v21 }
 0x428   :  { %v1645_v25 = vcombine.low %v1641_v22, %v1642_v23 }
 0x42a   :  { %v1652_v30 = vrot.slane %v1645_v25, %v1651_v24 }
 0x42c   :  { %v1659_v26 = vrot.slane %v1652_v30, %v1651_v24 }
 0x42e   :  { %1665 = vst.msk [vmem:[#allocation3] sm:$0x3] %vm1663_vm1, %v1659_v26 }
 0x42f   :  { %2171 = shalt.err (!%p2168_p4)
}
 0x430   :  { %s2172_s12 = scalar_lea.hbm %s2740_s11, 32 }
 0x431   :  { %p2173_p5 = scmp.ne.s32.totalorder %s2740_s11, %s2172_s12  ;;  %p2176_p6 = scmp.lt.u32.totalorder %s2172_s12, %s2740_s11 }
 0x433   :  { %p2178_p7 = pnand %p2176_p6, %p2173_p5 }
 0x435   :  { %2181 = shalt.err (!%p2178_p7)
}
 0x436   :  { %1675 = dma.vmem_to_hbm [thread:$0]  %s1673_s9, 32, %s2740_s11, [#allocation4]  }
 0x437   :  { %2182 = dma.done.wait [#allocation4], 32  }
 0x438   :  { %2183 = vsyncadd [#allocation4], 4294967264 }
 0x439   :  { %1679 = vsyncpa [#allocation4], 1 }

</bundles_post_ra>
